<compile_context>
chip_gen: v7x
topology: tpu7x:2x2x1
jax: 0.10.0
libtpu: 0.0.40
codegen_flags: <defaults>
</compile_context>

<pallas_src>
import functools

import jax
import jax.numpy as jnp
from jax.experimental import pallas as pl
from jax.experimental.pallas import tpu as pltpu


def _round_up(x, m):
    return (x + m - 1) // m * m


def _pick_row_block(oh, cap=16):
    """Largest divisor of `oh` that is <= cap (output-row block per grid step)."""
    t = min(oh, cap)
    while oh % t:
        t -= 1
    return t


_VMEM_LIMIT = 32 * 1024 * 1024   # explicit scoped-VMEM headroom (v5e default is 16 MiB)


# ---------------------------------------------------------------------------
# Pallas kernels
# ---------------------------------------------------------------------------

def _matmul_bias_kernel(a_ref, b_ref, bias_ref, o_ref, *, activation):
    """(tm, K) @ (K, OC) + bias in a single K step (K is tiny for conv1)."""
    acc = jnp.dot(a_ref[...], b_ref[...], preferred_element_type=jnp.float32)
    acc = acc + bias_ref[...]
    if activation == "leaky":
        acc = jnp.where(acc > 0, acc, 0.2 * acc)           # f32 epilogue (v5e-safe)
    o_ref[...] = acc.astype(o_ref.dtype)


def _conv3x3_s2_kernel(xa_ref, xb_ref, wa_ref, wb_ref, bias_ref, o_ref, *, activation):
    """Direct 3x3 / stride-2 / pad-1 conv on a block of output rows (no im2col).

    Input layout: row/col-paired padded activation (1, t, 2, OW+1, 2C) where the
    last dim interleaves [even-col C | odd-col C].  Kernel-row taps i=0,1 live in
    row-pair oh; i=2 is the first row of pair oh+1 (one extra pair, xb_ref).
    Column taps j=0,1 live in W-pair ow (full 2C); j=2 is handled with the W-pair
    ow+1 slab against a weight whose odd-column half is zero.
    """
    t = xa_ref.shape[1]
    ow = o_ref.shape[2]
    ocp = o_ref.shape[3]
    c2 = wa_ref.shape[1]                                   # = 2*C

    xa = xa_ref[...]                                       # (1, t, 2, OW+1, 2C)
    xb = xb_ref[...]                                       # (1, 1, 2, OW+1, 2C)
    acc = jnp.zeros((t * ow, ocp), jnp.float32)
    for i in range(3):                                     # kernel-row taps
        if i < 2:
            rows = xa[0, :, i, :, :]                       # (t, OW+1, 2C)
        elif t > 1:
            rows = jnp.concatenate([xa[0, 1:, 0, :, :], xb[0, :, 0, :, :]], axis=0)
        else:
            rows = xb[0, :, 0, :, :]
        a_main = rows[:, :ow, :].reshape(t * ow, c2)       # cols 2ow, 2ow+1
        a_tail = rows[:, 1:ow + 1, :].reshape(t * ow, c2)  # cols 2ow+2 (+ zero-weighted)
        acc += jnp.dot(a_main, wa_ref[i], preferred_element_type=jnp.float32)
        acc += jnp.dot(a_tail, wb_ref[i], preferred_element_type=jnp.float32)
    acc = acc + bias_ref[...]
    if activation == "leaky":
        acc = jnp.where(acc > 0, acc, 0.2 * acc)
    o_ref[...] = acc.reshape(1, t, ow, ocp).astype(o_ref.dtype)


def _conv3x3_s1_kernel(xa_ref, xb1_ref, xb2_ref, w_ref, bias_ref, o_ref, *, activation):
    """Direct 3x3 / stride-1 / pad-1 conv on a block of output rows (no im2col)."""
    t = xa_ref.shape[1]
    ow = o_ref.shape[2]
    ocp = o_ref.shape[3]
    c = xa_ref.shape[3]

    x = jnp.concatenate([xa_ref[0], xb1_ref[0], xb2_ref[0]], axis=0)   # (t+2, OW+2, C)
    acc = jnp.zeros((t * ow, ocp), jnp.float32)
    for i in range(3):
        for j in range(3):
            a = x[i:i + t, j:j + ow, :].reshape(t * ow, c)
            acc += jnp.dot(a, w_ref[i, j], preferred_element_type=jnp.float32)
    acc = acc + bias_ref[...]
    if activation == "leaky":
        acc = jnp.where(acc > 0, acc, 0.2 * acc)
    o_ref[...] = acc.reshape(1, t, ow, ocp).astype(o_ref.dtype)


def _instnorm_lrelu_kernel(x_ref, o_ref):
    """Per-(batch, channel-tile) InstanceNorm (no affine, eps=1e-5) + LeakyReLU(0.2).

    bf16 in/out; exact two-pass (centered) statistics in f32; rsqrt goes to the EUP.
    """
    x = x_ref[...].astype(jnp.float32)                      # (1, HW, tc)
    inv_hw = 1.0 / x.shape[1]
    mean = jnp.sum(x, axis=1, keepdims=True) * inv_hw
    xc = x - mean
    var = jnp.sum(xc * xc, axis=1, keepdims=True) * inv_hw  # biased, like PyTorch
    y = xc * jax.lax.rsqrt(var + 1e-5)
    y = jnp.where(y > 0, y, 0.2 * y)
    o_ref[...] = y.astype(o_ref.dtype)


# ---------------------------------------------------------------------------
# Wrappers
# ---------------------------------------------------------------------------

def conv3x3_s2_pallas(x_nhwc, w_oihw, b, activation="none", out_dtype=jnp.bfloat16):
    """3x3 conv, stride 2, padding 1, direct (no im2col)."""
    N, H, W, C = x_nhwc.shape
    OC = w_oihw.shape[0]
    assert H % 2 == 0 and W % 2 == 0, "stride-2 conv expects even spatial dims"
    OH, OW = H // 2, W // 2
    OCp = _round_up(OC, 128)

    xp = jnp.pad(x_nhwc.astype(jnp.bfloat16), ((0, 0), (1, 1), (1, 1), (0, 0)))
    # Pure reshape (no data movement): (N, H+2, W+2, C) -> (N, (H+2)/2, 2, (W+2)/2, 2C)
    xr = xp.reshape(N, (H + 2) // 2, 2, (W + 2) // 2, 2 * C)

    wk = jnp.transpose(w_oihw, (2, 3, 1, 0)).astype(jnp.bfloat16)        # (3,3,C,OC)
    wk = jnp.pad(wk, ((0, 0), (0, 0), (0, 0), (0, OCp - OC)))
    wa = jnp.concatenate([wk[:, 0], wk[:, 1]], axis=1)                   # (3, 2C, OCp)
    wb = jnp.concatenate([wk[:, 2], jnp.zeros_like(wk[:, 2])], axis=1)   # (3, 2C, OCp)
    bias = jnp.pad(b.astype(jnp.float32), (0, OCp - OC)).reshape(1, OCp)

    t_oh = _pick_row_block(OH)
    grid = (N, OH // t_oh)
    Wp2 = (W + 2) // 2

    cost = pl.CostEstimate(
        flops=2 * N * OH * OW * 12 * C * OCp,
        transcendentals=0,
        bytes_accessed=xr.size * 2 + wa.size * 2 + wb.size * 2 + bias.size * 4
        + N * OH * OW * OCp * jnp.dtype(out_dtype).itemsize,
    )

    out = pl.pallas_call(
        functools.partial(_conv3x3_s2_kernel, activation=activation),
        grid=grid,
        in_specs=[
            pl.BlockSpec((1, t_oh, 2, Wp2, 2 * C), lambda n, r: (n, r, 0, 0, 0)),
            pl.BlockSpec((1, 1, 2, Wp2, 2 * C),
                         lambda n, r: (n, (r + 1) * t_oh, 0, 0, 0)),
            pl.BlockSpec((3, 2 * C, OCp), lambda n, r: (0, 0, 0)),
            pl.BlockSpec((3, 2 * C, OCp), lambda n, r: (0, 0, 0)),
            pl.BlockSpec((1, OCp), lambda n, r: (0, 0)),
        ],
        out_specs=pl.BlockSpec((1, t_oh, OW, OCp), lambda n, r: (n, r, 0, 0)),
        out_shape=jax.ShapeDtypeStruct((N, OH, OW, OCp), out_dtype),
        compiler_params=pltpu.CompilerParams(
            dimension_semantics=("parallel", "parallel"),
            vmem_limit_bytes=_VMEM_LIMIT),
        cost_estimate=cost,
    )(xr, xr, wa, wb, bias)

    return out if OCp == OC else out[..., :OC]


def conv3x3_s1_pallas(x_nhwc, w_oihw, b, activation="none", out_dtype=jnp.float32):
    """3x3 conv, stride 1, padding 1, direct (no im2col)."""
    N, H, W, C = x_nhwc.shape
    OC = w_oihw.shape[0]
    OH, OW = H, W
    OCp = _round_up(OC, 128)

    xp = jnp.pad(x_nhwc.astype(jnp.bfloat16), ((0, 0), (1, 1), (1, 1), (0, 0)))
    wk = jnp.transpose(w_oihw, (2, 3, 1, 0)).astype(jnp.bfloat16)        # (3,3,C,OC)
    wk = jnp.pad(wk, ((0, 0), (0, 0), (0, 0), (0, OCp - OC)))
    bias = jnp.pad(b.astype(jnp.float32), (0, OCp - OC)).reshape(1, OCp)

    t_oh = _pick_row_block(OH)
    grid = (N, OH // t_oh)
    Wp = W + 2

    cost = pl.CostEstimate(
        flops=2 * N * OH * OW * 9 * C * OCp,
        transcendentals=0,
        bytes_accessed=xp.size * 2 + wk.size * 2 + bias.size * 4
        + N * OH * OW * OCp * jnp.dtype(out_dtype).itemsize,
    )

    out = pl.pallas_call(
        functools.partial(_conv3x3_s1_kernel, activation=activation),
        grid=grid,
        in_specs=[
            pl.BlockSpec((1, t_oh, Wp, C), lambda n, r: (n, r, 0, 0)),
            pl.BlockSpec((1, 1, Wp, C), lambda n, r: (n, (r + 1) * t_oh, 0, 0)),
            pl.BlockSpec((1, 1, Wp, C), lambda n, r: (n, (r + 1) * t_oh + 1, 0, 0)),
            pl.BlockSpec((3, 3, C, OCp), lambda n, r: (0, 0, 0, 0)),
            pl.BlockSpec((1, OCp), lambda n, r: (0, 0)),
        ],
        out_specs=pl.BlockSpec((1, t_oh, OW, OCp), lambda n, r: (n, r, 0, 0)),
        out_shape=jax.ShapeDtypeStruct((N, OH, OW, OCp), out_dtype),
        compiler_params=pltpu.CompilerParams(
            dimension_semantics=("parallel", "parallel"),
            vmem_limit_bytes=_VMEM_LIMIT),
        cost_estimate=cost,
    )(xp, xp, xp, wk, bias)

    return out if OCp == OC else out[..., :OC]


def conv1_im2col_pallas(x_nhwc, w_oihw, b, out_dtype=jnp.bfloat16):
    """First conv (IC=3), stride 2: im2col + single-K-step matmul, fused bias+LeakyReLU.

    im2col is kept ONLY here: with 3 input channels the 27-column bf16 patch matrix
    is ~5x smaller than this layer's own 64-channel output, so it is cheap to stream.
    """
    N, H, W, C = x_nhwc.shape
    OC = w_oihw.shape[0]
    stride = 2
    OH, OW = H // 2, W // 2

    xp = jnp.pad(x_nhwc.astype(jnp.bfloat16), ((0, 0), (1, 1), (1, 1), (0, 0)))
    cols = []
    for i in range(3):
        for j in range(3):
            cols.append(
                jax.lax.slice(
                    xp, (0, i, j, 0),
                    (N, i + (OH - 1) * stride + 1, j + (OW - 1) * stride + 1, C),
                    (1, stride, stride, 1)))
    patches = jnp.stack(cols, axis=3)                      # (N, OH, OW, 9, C) bf16
    A = patches.reshape(N * OH * OW, 9 * C)
    Bw = jnp.transpose(w_oihw, (2, 3, 1, 0)).reshape(9 * C, OC).astype(jnp.bfloat16)

    M, K = A.shape
    Kp = _round_up(K, 32)                                  # 27 -> 32 only
    tm = min(1024, _round_up(M, 8))
    Mp = _round_up(M, tm)
    A_p = jnp.pad(A, ((0, Mp - M), (0, Kp - K)))
    B_p = jnp.pad(Bw, ((0, Kp - K), (0, 0)))
    bias = b.astype(jnp.float32).reshape(1, OC)

    cost = pl.CostEstimate(
        flops=2 * Mp * Kp * OC, transcendentals=0,
        bytes_accessed=A_p.size * 2 + B_p.size * 2 + bias.size * 4 + Mp * OC * 2)

    out = pl.pallas_call(
        functools.partial(_matmul_bias_kernel, activation="leaky"),
        grid=(Mp // tm,),
        in_specs=[
            pl.BlockSpec((tm, Kp), lambda i: (i, 0)),
            pl.BlockSpec((Kp, OC), lambda i: (0, 0)),
            pl.BlockSpec((1, OC), lambda i: (0, 0)),
        ],
        out_specs=pl.BlockSpec((tm, OC), lambda i: (i, 0)),
        out_shape=jax.ShapeDtypeStruct((Mp, OC), out_dtype),
        compiler_params=pltpu.CompilerParams(
            dimension_semantics=("parallel",),
            vmem_limit_bytes=_VMEM_LIMIT),
        cost_estimate=cost,
    )(A_p, B_p, bias)

    return out[:M].reshape(N, OH, OW, OC)


def instnorm_lrelu_pallas(x_nhwc):
    """InstanceNorm2d(affine=False, eps=1e-5) + LeakyReLU(0.2); bf16 in/out, f32 stats."""
    N, H, W, C = x_nhwc.shape
    HW = H * W
    xr = x_nhwc.reshape(N, HW, C)
    tc = 128 if C % 128 == 0 else C                        # channel tiling bounds VMEM
    out = pl.pallas_call(
        _instnorm_lrelu_kernel,
        grid=(N, C // tc),
        in_specs=[pl.BlockSpec((1, HW, tc), lambda n, c: (n, 0, c))],
        out_specs=pl.BlockSpec((1, HW, tc), lambda n, c: (n, 0, c)),
        out_shape=jax.ShapeDtypeStruct((N, HW, C), x_nhwc.dtype),
        compiler_params=pltpu.CompilerParams(
            dimension_semantics=("parallel", "parallel")),
    )(xr)
    return out.reshape(N, H, W, C)


def discriminator_forward(x_nchw, params):
    """Full forward pass. Input NCHW f32, output NCHW (N, 1, H/16, W/16) f32."""
    x = jnp.transpose(x_nchw, (0, 2, 3, 1))                              # -> NHWC
    # block 1: conv s2 + LeakyReLU (fused epilogue), bf16 activations from here on
    x = conv1_im2col_pallas(x, params["w1"], params["b1"])
    # blocks 2-4: direct conv s2 (bf16 out) + InstanceNorm + LeakyReLU (bf16 in/out)
    for i in (2, 3, 4):
        x = conv3x3_s2_pallas(x, params[f"w{i}"], params[f"b{i}"],
                              activation="none", out_dtype=jnp.bfloat16)
        x = instnorm_lrelu_pallas(x)
    # final conv s1, 1 output channel, f32 output, no activation
    x = conv3x3_s1_pallas(x, params["w5"], params["b5"],
                          activation="none", out_dtype=jnp.float32)
    return jnp.transpose(x, (0, 3, 1, 2)).astype(jnp.float32)            # -> NCHW


# ---------------------------------------------------------------------------
# Pure-JAX reference (f32, for correctness check)
# ---------------------------------------------------------------------------

def _ref_conv(x_nchw, w, b, stride):
    y = jax.lax.conv_general_dilated(
        x_nchw, w, (stride, stride), ((1, 1), (1, 1)),
        dimension_numbers=("NCHW", "OIHW", "NCHW"),
        precision=jax.lax.Precision.HIGHEST,
    )
    return y + b[None, :, None, None]


def _ref_instnorm(x_nchw, eps=1e-5):
    mean = jnp.mean(x_nchw, axis=(2, 3), keepdims=True)
    var = jnp.mean((x_nchw - mean) ** 2, axis=(2, 3), keepdims=True)
    return (x_nchw - mean) * jax.lax.rsqrt(var + eps)


def _leaky(x):
    return jnp.where(x > 0, x, 0.2 * x)


def discriminator_reference(x_nchw, params):
    x = _leaky(_ref_conv(x_nchw, params["w1"], params["b1"], 2))
    for i in (2, 3, 4):
        x = _leaky(_ref_instnorm(_ref_conv(x, params[f"w{i}"], params[f"b{i}"], 2)))
    return _ref_conv(x, params["w5"], params["b5"], 1)


# ---------------------------------------------------------------------------
# Parameter init (deterministic, synthetic)
# ---------------------------------------------------------------------------

def init_params(key, in_channels=3):
    channels = [(in_channels, 64), (64, 128), (128, 256), (256, 512), (512, 1)]
    params = {}
    for idx, (cin, cout) in enumerate(channels, start=1):
        key, kw_, kb_ = jax.random.split(key, 3)
        params[f"w{idx}"] = 0.05 * jax.random.normal(kw_, (cout, cin, 3, 3), jnp.float32)
        params[f"b{idx}"] = 0.05 * jax.random.normal(kb_, (cout,), jnp.float32)
    return params


# ---------------------------------------------------------------------------
# Main
# ---------------------------------------------------------------------------

if __name__ == "__main__":
    key = jax.random.PRNGKey(0)
    key, kx = jax.random.split(key)

    # 64x64 keeps every InstanceNorm window reasonably conditioned (>=16 samples).
    x = jax.random.normal(kx, (2, 3, 64, 64), jnp.float32)   # NCHW, PyTorch layout
    params = init_params(key)

    out = discriminator_forward(x, params)
    out = jax.block_until_ready(out)

    ref = discriminator_reference(x, params)
    assert out.shape == ref.shape == (2, 1, 4, 4), (out.shape, ref.shape)

    # Tolerance is relative to the activation scale: bf16 MXU operands plus bf16
    # intermediate activations (per the perf review) give errors that scale with the
    # magnitude of the summed terms (K up to 4608), not with near-zero outputs.
    err = float(jnp.max(jnp.abs(out - ref)))
    scale = float(jnp.max(jnp.abs(ref)))
    assert err <= 6e-2 + 6e-2 * scale, (err, scale)

    print("KERNEL_OK")
</pallas_src>

<mosaic_0001>
module attributes {stable_mosaic.version = 11 : i64} {
  func.func @_matmul_bias_kernel(%arg0: i32, %arg1: memref<1024x32xbf16, #tpu.memory_space<vmem>>, %arg2: memref<32x64xbf16, #tpu.memory_space<vmem>>, %arg3: memref<1x64xf32, #tpu.memory_space<vmem>>, %arg4: memref<1024x64xbf16, #tpu.memory_space<vmem>>) attributes {dimension_semantics = [#tpu.dimension_semantics<parallel>], iteration_bounds = array<i64: 2>, scalar_prefetch = 0 : i64, scratch_operands = 0 : i64, tpu.core_type = #tpu.core_type<tc>, window_params = [{transform_indices = @transform_0, window_bounds = array<i64: 1024, 32>}, {pipeline_mode = #tpu.pipeline_mode<synchronous>, transform_indices = @transform_1, window_bounds = array<i64: 32, 64>}, {pipeline_mode = #tpu.pipeline_mode<synchronous>, transform_indices = @transform_2, window_bounds = array<i64: 1, 64>}, {transform_indices = @transform_3, window_bounds = array<i64: 1024, 64>}]} {
    %c0 = arith.constant 0 : index
    %c0_0 = arith.constant 0 : index
    %0 = vector.load %arg1[%c0, %c0_0] : memref<1024x32xbf16, #tpu.memory_space<vmem>>, vector<1024x32xbf16>
    %c0_1 = arith.constant 0 : index
    %c0_2 = arith.constant 0 : index
    %1 = vector.load %arg2[%c0_1, %c0_2] : memref<32x64xbf16, #tpu.memory_space<vmem>>, vector<32x64xbf16>
    %cst = arith.constant dense<0.000000e+00> : vector<1024x64xf32>
    %2 = tpu.matmul %0, %1, %cst {dimension_numbers = #tpu.dot_dimension_numbers<[1], [0], [0], [1], [0, 0, 1, 1], [], []>} : vector<1024x32xbf16>, vector<32x64xbf16>, vector<1024x64xf32> -> vector<1024x64xf32>
    %c0_3 = arith.constant 0 : index
    %c0_4 = arith.constant 0 : index
    %3 = vector.load %arg3[%c0_3, %c0_4] : memref<1x64xf32, #tpu.memory_space<vmem>>, vector<1x64xf32>
    %4 = vector.broadcast %3 : vector<1x64xf32> to vector<1024x64xf32>
    %5 = arith.addf %2, %4 : vector<1024x64xf32>
    %cst_5 = arith.constant 0.000000e+00 : f32
    %6 = vector.broadcast %cst_5 : f32 to vector<1024x64xf32>
    %7 = arith.cmpf ogt, %5, %6 : vector<1024x64xf32>
    %cst_6 = arith.constant 2.000000e-01 : f32
    %8 = vector.broadcast %cst_6 : f32 to vector<1024x64xf32>
    %9 = arith.mulf %8, %5 : vector<1024x64xf32>
    %10 = arith.select %7, %5, %9 : vector<1024x64xi1>, vector<1024x64xf32>
    %11 = arith.truncf %10 : vector<1024x64xf32> to vector<1024x64xbf16>
    %c0_7 = arith.constant 0 : index
    %c0_8 = arith.constant 0 : index
    %12 = vector.load %arg4[%c0_7, %c0_8] : memref<1024x64xbf16, #tpu.memory_space<vmem>>, vector<1024x64xbf16>
    tpu.vector_store %arg4[%c0_7, %c0_8], %11 {strides = array<i32>} : memref<1024x64xbf16, #tpu.memory_space<vmem>>, vector<1024x64xbf16>,
    return
  }
  func.func @transform_0(%arg0: i32) -> (i32, i32) {
    %c0_i32 = arith.constant 0 : i32
    %c0_i32_0 = arith.constant 0 : i32
    return %arg0, %c0_i32 : i32, i32
  }
  func.func @transform_1(%arg0: i32) -> (i32, i32) {
    %c0_i32 = arith.constant 0 : i32
    %c0_i32_0 = arith.constant 0 : i32
    %c0_i32_1 = arith.constant 0 : i32
    return %c0_i32, %c0_i32_0 : i32, i32
  }
  func.func @transform_2(%arg0: i32) -> (i32, i32) {
    %c0_i32 = arith.constant 0 : i32
    %c0_i32_0 = arith.constant 0 : i32
    %c0_i32_1 = arith.constant 0 : i32
    return %c0_i32, %c0_i32_0 : i32, i32
  }
  func.func @transform_3(%arg0: i32) -> (i32, i32) {
    %c0_i32 = arith.constant 0 : i32
    %c0_i32_0 = arith.constant 0 : i32
    return %arg0, %c0_i32 : i32, i32
  }
}

</mosaic_0001>

<bundles_post_ra>
// kernel: tpu_custom_call.1
= control target key start
LH: loop header
LB: loop body
LE: loop exit
PB: predicated region body
PF: predicated region fallthrough
CT: control target
= control target key end

     0   :  { %s3168_s12 = smov 0   ;;  %s3987_s0 = inlined_call_operand.vmem [shape: bf16[2048,32], index: 0, kind: input, shape index: {}]   ;;  %s3988_s1 = inlined_call_operand.vmem [shape: bf16[32,64], index: 1, kind: input, shape index: {}]   ;;  %s3989_s2 = inlined_call_operand.vmem [shape: f32[1,64], index: 2, kind: input, shape index: {}]   ;;  %s3990_s3 = inlined_call_operand.vmem [shape: bf16[2048,64], index: 3, kind: output, shape index: {}]  }
   0x1 LB: > { %s2465_s13 = sadd.s32 4294967295, %s3146_s12   ;;  %p2469_p0 = scmp.ge.s32.totalorder %s3146_s12, 1  ;;  %s3146_s12 = sphi %s3168_s12, %s13_s12  }
   0x2   : > { %p138_p1 = scmp.lt.s32.totalorder %s3146_s12, 3 }
   0x4   : > { %p139_p2 = pnand %p2469_p0, %p138_p1 }
   0x5   : > { %v3073_v0 = vld [vmem:[%s3988_s1] sm:$0xff] (!%p139_p2)   ;;  %s2470_s16 = sshll.u32 (!%p139_p2), %s2465_s13, 7  ;;  %v3074_v1 = vld [vmem:[%s3988_s1 + $0x8] sm:$0xff] (!%p139_p2)   ;;  %vm646_vm0 = vcmask (!%p139_p2), 261120   ;;  %vm2280_vm1 = vcmask (!%p139_p2), 519168  }
   0x6   : > { %142 = sbr.rel (%p139_p2) target bundleno = 397 (0x18d), region = 32  ;;  %p163_p3 = scmp.lt.s32.totalorder (!%p139_p2), %s2470_s16, 255  ;;  %2929 = vmatprep.subr.bf16.mxu0 (!%p139_p2), %v3073_v0  ;;  %3061 = vmatprep.subr.bf16.mxu1 (!%p139_p2), %v3073_v0 }
   0x7   : > { %2930 = vmatpush3.bf16.msra.mxu0 (!%p139_p2), %v3073_v0  ;;  %3063 = vmatpush3.bf16.msra.mxu1 (!%p139_p2), %v3073_v0 }
   0x8   : > { %2931 = vmatprep.subr.bf16.mxu0 (!%p139_p2), %v3074_v1  ;;  %3062 = vmatprep.subr.bf16.mxu1 (!%p139_p2), %v3074_v1 }
   0xb   : > { %2932 = vmatpush3.bf16.msra.mxu0 (!%p139_p2), %v3074_v1  ;;  %3064 = vmatpush3.bf16.msra.mxu1 (!%p139_p2), %v3074_v1 }
   0xd   : > { %s3992_s16 = smov (!%p163_p3, %s2470_s16), 255 }
   0xe   : > { %s2471_s19 = sshll.u32 %s3992_s16, 2 }
   0xf   : > { %s3190_s22 = scalar_lea.vmem %s3987_s0, %s2471_s19  ;;  %s3335_s27 = scalar_lea.vmem %s3990_s3, %s2471_s19 }
  0x10   : > { %v3075_v2 = vld [vmem:[%s3190_s22] sm:$0xff]   ;;  %v3077_v4 = vld [vmem:[%s3190_s22 + $0x8] sm:$0xff]   ;;  %v3079_v6 = vld [vmem:[%s3190_s22 + $0x10] sm:$0xff]  }
  0x11   : > { %v3076_v3 = vld [vmem:[%s3190_s22 + $0x100] sm:$0xff]   ;;  %2933 = vmatprep.mubr.msk.bf16.mxu0 %vm646_vm0, %v3075_v2  ;;  %v3078_v5 = vld [vmem:[%s3190_s22 + $0x108] sm:$0xff]   ;;  %v3080_v7 = vld [vmem:[%s3190_s22 + $0x110] sm:$0xff]  }
  0x12   : > { %2997 = vmatprep.mubr.msk.bf16.mxu1 %vm646_vm0, %v3076_v3  ;;  %2934 = vmatmul.mubr.msk.bf16.vlgmr.msra.gmra.mrb[0].mxu0 %vm646_vm0, %v3077_v4  ;;  %v3081_v8 = vld [vmem:[%s3190_s22 + $0x18] sm:$0xff]   ;;  %v3083_v10 = vld [vmem:[%s3190_s22 + $0x20] sm:$0xff]   ;;  %v3085_v12 = vld [vmem:[%s3190_s22 + $0x28] sm:$0xff]  }
  0x13   : > { %2998 = vmatmul.mubr.msk.bf16.vlgmr.msra.gmra.mrb[0].mxu1 %vm646_vm0, %v3078_v5  ;;  %2937 = vmatprep.mubr.msk.bf16.mxu0 %vm646_vm0, %v3079_v6  ;;  %v3082_v9 = vld [vmem:[%s3190_s22 + $0x118] sm:$0xff]   ;;  %v3084_v11 = vld [vmem:[%s3190_s22 + $0x120] sm:$0xff]   ;;  %v3086_v13 = vld [vmem:[%s3190_s22 + $0x128] sm:$0xff]  }
  0x14   : > { %3001 = vmatprep.mubr.msk.bf16.mxu1 %vm646_vm0, %v3080_v7  ;;  %v3087_v14 = vld [vmem:[%s3190_s22 + $0x30] sm:$0xff]   ;;  %v3089_v16 = vld [vmem:[%s3190_s22 + $0x38] sm:$0xff]   ;;  %v3091_v18 = vld [vmem:[%s3190_s22 + $0x40] sm:$0xff]  }
  0x15   : > { %v3088_v15 = vld [vmem:[%s3190_s22 + $0x130] sm:$0xff]   ;;  %v3090_v17 = vld [vmem:[%s3190_s22 + $0x138] sm:$0xff]   ;;  %v3092_v19 = vld [vmem:[%s3190_s22 + $0x140] sm:$0xff]  }
  0x16   : > { %v3093_v20 = vld [vmem:[%s3190_s22 + $0x48] sm:$0xff]   ;;  %v3095_v22 = vld [vmem:[%s3190_s22 + $0x50] sm:$0xff]   ;;  %v3097_v24 = vld [vmem:[%s3190_s22 + $0x58] sm:$0xff]  }
  0x17   : > { %v3094_v21 = vld [vmem:[%s3190_s22 + $0x148] sm:$0xff]   ;;  %v3096_v23 = vld [vmem:[%s3190_s22 + $0x150] sm:$0xff]   ;;  %v3098_v25 = vld [vmem:[%s3190_s22 + $0x158] sm:$0xff]  }
  0x18   : > { %v3099_v26 = vld [vmem:[%s3190_s22 + $0x60] sm:$0xff]   ;;  %v3101_v28 = vld [vmem:[%s3190_s22 + $0x68] sm:$0xff]   ;;  %v3103_v30 = vld [vmem:[%s3190_s22 + $0x70] sm:$0xff]  }
  0x19   : > { %v3100_v27 = vld [vmem:[%s3190_s22 + $0x160] sm:$0xff]   ;;  %v3102_v29 = vld [vmem:[%s3190_s22 + $0x168] sm:$0xff]   ;;  %v3104_v31 = vld [vmem:[%s3190_s22 + $0x170] sm:$0xff]  }
  0x1a   : > { %2938 = vmatmul.mubr.msk.bf16.gmra.mrb[4].mxu0 %vm646_vm0, %v3081_v8  ;;  %v3105_v32 = vld [vmem:[%s3190_s22 + $0x78] sm:$0xff]   ;;  %v3107_v34 = vld [vmem:[%s3190_s22 + $0x80] sm:$0xff]   ;;  %v3109_v36 = vld [vmem:[%s3190_s22 + $0x88] sm:$0xff]  }
  0x1b   : > { %3002 = vmatmul.mubr.msk.bf16.gmra.mrb[4].mxu1 %vm646_vm0, %v3082_v9  ;;  %2941 = vmatprep.mubr.msk.bf16.mxu0 %vm646_vm0, %v3083_v10  ;;  %v3106_v33 = vld [vmem:[%s3190_s22 + $0x178] sm:$0xff]   ;;  %v3108_v35 = vld [vmem:[%s3190_s22 + $0x180] sm:$0xff]   ;;  %v3110_v37 = vld [vmem:[%s3190_s22 + $0x188] sm:$0xff]  }
  0x1c   : > { %3005 = vmatprep.mubr.msk.bf16.mxu1 %vm646_vm0, %v3084_v11  ;;  %v3111_v38 = vld [vmem:[%s3190_s22 + $0x90] sm:$0xff]   ;;  %v3113_v40 = vld [vmem:[%s3190_s22 + $0x98] sm:$0xff]   ;;  %v3115_v42 = vld [vmem:[%s3190_s22 + $0xa0] sm:$0xff]  }
  0x1d   : > { %v3112_v39 = vld [vmem:[%s3190_s22 + $0x190] sm:$0xff]   ;;  %v3114_v41 = vld [vmem:[%s3190_s22 + $0x198] sm:$0xff]   ;;  %v3116_v43 = vld [vmem:[%s3190_s22 + $0x1a0] sm:$0xff]  }
  0x1e   : > { %v3117_v44 = vld [vmem:[%s3190_s22 + $0xa8] sm:$0xff]   ;;  %v3119_v46 = vld [vmem:[%s3190_s22 + $0xb0] sm:$0xff]   ;;  %v3121_v48 = vld [vmem:[%s3190_s22 + $0xb8] sm:$0xff]  }
  0x1f   : > { %v3118_v45 = vld [vmem:[%s3190_s22 + $0x1a8] sm:$0xff]   ;;  %v3120_v47 = vld [vmem:[%s3190_s22 + $0x1b0] sm:$0xff]   ;;  %v3122_v49 = vld [vmem:[%s3190_s22 + $0x1b8] sm:$0xff]  }
  0x20   : > { %v3123_v50 = vld [vmem:[%s3190_s22 + $0xc0] sm:$0xff]   ;;  %v3125_v52 = vld [vmem:[%s3190_s22 + $0xc8] sm:$0xff]   ;;  %v3127_v54 = vld [vmem:[%s3190_s22 + $0xd0] sm:$0xff]  }
  0x21   : > { %v3124_v51 = vld [vmem:[%s3190_s22 + $0x1c0] sm:$0xff]   ;;  %v3126_v53 = vld [vmem:[%s3190_s22 + $0x1c8] sm:$0xff]   ;;  %v3128_v55 = vld [vmem:[%s3190_s22 + $0x1d0] sm:$0xff]  }
  0x22   : > { %2942 = vmatmul.mubr.msk.bf16.gmra.mrb[8].mxu0 %vm646_vm0, %v3085_v12  ;;  %v3129_v56 = vld [vmem:[%s3190_s22 + $0xd8] sm:$0xff]   ;;  %v3131_v58 = vld [vmem:[%s3190_s22 + $0xe0] sm:$0xff]   ;;  %v3133_v60 = vld [vmem:[%s3190_s22 + $0xe8] sm:$0xff]  }
  0x23   : > { %3006 = vmatmul.mubr.msk.bf16.gmra.mrb[8].mxu1 %vm646_vm0, %v3086_v13  ;;  %2945 = vmatprep.mubr.msk.bf16.mxu0 %vm646_vm0, %v3087_v14  ;;  %v3130_v57 = vld [vmem:[%s3190_s22 + $0x1d8] sm:$0xff]   ;;  %v3132_v59 = vld [vmem:[%s3190_s22 + $0x1e0] sm:$0xff]   ;;  %v3134_v61 = vld [vmem:[%s3190_s22 + $0x1e8] sm:$0xff]  }
  0x24   : > { %3009 = vmatprep.mubr.msk.bf16.mxu1 %vm646_vm0, %v3088_v15  ;;  %v3135_v62 = vld [vmem:[%s3190_s22 + $0xf0] sm:$0xff]   ;;  %v3137_v0 = vld [vmem:[%s3190_s22 + $0xf8] sm:$0xff]   ;;  %v3323_v2 = vld [vmem:[%s3989_s2] ss:$0 sm:$0xff] }
  0x25   : > { %v3136_v63 = vld [vmem:[%s3190_s22 + $0x1f0] sm:$0xff]   ;;  %v3138_v1 = vld [vmem:[%s3190_s22 + $0x1f8] sm:$0xff]  }
  0x2a   : > { %2946 = vmatmul.mubr.msk.bf16.gmra.mrb[12].mxu0 %vm646_vm0, %v3089_v16 }
  0x2b   : > { %3010 = vmatmul.mubr.msk.bf16.gmra.mrb[12].mxu1 %vm646_vm0, %v3090_v17  ;;  %2949 = vmatprep.mubr.msk.bf16.mxu0 %vm646_vm0, %v3091_v18 }
  0x2c   : > { %3013 = vmatprep.mubr.msk.bf16.mxu1 %vm646_vm0, %v3092_v19 }
  0x32   : > { %2950 = vmatmul.mubr.msk.bf16.gmra.mrb[16].mxu0 %vm646_vm0, %v3093_v20 }
  0x33   : > { %3014 = vmatmul.mubr.msk.bf16.gmra.mrb[16].mxu1 %vm646_vm0, %v3094_v21  ;;  %2953 = vmatprep.mubr.msk.bf16.mxu0 %vm646_vm0, %v3095_v22 }
  0x34   : > { %3017 = vmatprep.mubr.msk.bf16.mxu1 %vm646_vm0, %v3096_v23 }
  0x3a   : > { %2954 = vmatmul.mubr.msk.bf16.gmra.mrb[20].mxu0 %vm646_vm0, %v3097_v24 }
  0x3b   : > { %3018 = vmatmul.mubr.msk.bf16.gmra.mrb[20].mxu1 %vm646_vm0, %v3098_v25  ;;  %2957 = vmatprep.mubr.msk.bf16.mxu0 %vm646_vm0, %v3099_v26 }
  0x3c   : > { %3021 = vmatprep.mubr.msk.bf16.mxu1 %vm646_vm0, %v3100_v27 }
  0x42   : > { %2958 = vmatmul.mubr.msk.bf16.gmra.mrb[24].mxu0 %vm646_vm0, %v3101_v28 }
  0x43   : > { %3022 = vmatmul.mubr.msk.bf16.gmra.mrb[24].mxu1 %vm646_vm0, %v3102_v29  ;;  %2961 = vmatprep.mubr.msk.bf16.mxu0 %vm646_vm0, %v3103_v30 }
  0x44   : > { %3025 = vmatprep.mubr.msk.bf16.mxu1 %vm646_vm0, %v3104_v31 }
  0x4a   : > { %2962 = vmatmul.mubr.msk.bf16.gmra.mrb[28].mxu0 %vm646_vm0, %v3105_v32 }
  0x4b   : > { %3026 = vmatmul.mubr.msk.bf16.gmra.mrb[28].mxu1 %vm646_vm0, %v3106_v33  ;;  %2965 = vmatprep.mubr.msk.bf16.mxu0 %vm646_vm0, %v3107_v34 }
  0x4c   : > { %3029 = vmatprep.mubr.msk.bf16.mxu1 %vm646_vm0, %v3108_v35 }
  0x52   : > { %2966 = vmatmul.mubr.msk.bf16.gmra.mrb[32].mxu0 %vm646_vm0, %v3109_v36 }
  0x53   : > { %3030 = vmatmul.mubr.msk.bf16.gmra.mrb[32].mxu1 %vm646_vm0, %v3110_v37  ;;  %2969 = vmatprep.mubr.msk.bf16.mxu0 %vm646_vm0, %v3111_v38 }
  0x54   : > { %3033 = vmatprep.mubr.msk.bf16.mxu1 %vm646_vm0, %v3112_v39 }
  0x5a   : > { %2970 = vmatmul.mubr.msk.bf16.gmra.mrb[36].mxu0 %vm646_vm0, %v3113_v40 }
  0x5b   : > { %3034 = vmatmul.mubr.msk.bf16.gmra.mrb[36].mxu1 %vm646_vm0, %v3114_v41  ;;  %2973 = vmatprep.mubr.msk.bf16.mxu0 %vm646_vm0, %v3115_v42 }
  0x5c   : > { %3037 = vmatprep.mubr.msk.bf16.mxu1 %vm646_vm0, %v3116_v43 }
  0x62   : > { %2974 = vmatmul.mubr.msk.bf16.gmra.mrb[40].mxu0 %vm646_vm0, %v3117_v44 }
  0x63   : > { %3038 = vmatmul.mubr.msk.bf16.gmra.mrb[40].mxu1 %vm646_vm0, %v3118_v45  ;;  %2977 = vmatprep.mubr.msk.bf16.mxu0 %vm646_vm0, %v3119_v46 }
  0x64   : > { %3041 = vmatprep.mubr.msk.bf16.mxu1 %vm646_vm0, %v3120_v47 }
  0x6a   : > { %2978 = vmatmul.mubr.msk.bf16.gmra.mrb[44].mxu0 %vm646_vm0, %v3121_v48 }
  0x6b   : > { %3042 = vmatmul.mubr.msk.bf16.gmra.mrb[44].mxu1 %vm646_vm0, %v3122_v49  ;;  %2981 = vmatprep.mubr.msk.bf16.mxu0 %vm646_vm0, %v3123_v50 }
  0x6c   : > { %3045 = vmatprep.mubr.msk.bf16.mxu1 %vm646_vm0, %v3124_v51 }
  0x72   : > { %2982 = vmatmul.mubr.msk.bf16.gmra.mrb[48].mxu0 %vm646_vm0, %v3125_v52 }
  0x73   : > { %3046 = vmatmul.mubr.msk.bf16.gmra.mrb[48].mxu1 %vm646_vm0, %v3126_v53  ;;  %2985 = vmatprep.mubr.msk.bf16.mxu0 %vm646_vm0, %v3127_v54 }
  0x74   : > { %3049 = vmatprep.mubr.msk.bf16.mxu1 %vm646_vm0, %v3128_v55 }
  0x7a   : > { %2986 = vmatmul.mubr.msk.bf16.gmra.mrb[52].mxu0 %vm646_vm0, %v3129_v56 }
  0x7b   : > { %3050 = vmatmul.mubr.msk.bf16.gmra.mrb[52].mxu1 %vm646_vm0, %v3130_v57  ;;  %2989 = vmatprep.mubr.msk.bf16.mxu0 %vm646_vm0, %v3131_v58 }
  0x7c   : > { %3053 = vmatprep.mubr.msk.bf16.mxu1 %vm646_vm0, %v3132_v59 }
  0x82   : > { %2990 = vmatmul.mubr.msk.bf16.gmra.mrb[56].mxu0 %vm646_vm0, %v3133_v60 }
  0x83   : > { %3054 = vmatmul.mubr.msk.bf16.gmra.mrb[56].mxu1 %vm646_vm0, %v3134_v61  ;;  %2993 = vmatprep.mubr.msk.bf16.mxu0 %vm646_vm0, %v3135_v62 }
  0x84   : > { %3057 = vmatprep.mubr.msk.bf16.mxu1 %vm646_vm0, %v3136_v63 }
  0x8a   : > { %2994 = vmatmul.mubr.msk.bf16.gmra.mrb[60].mxu0 %vm646_vm0, %v3137_v0 }
  0x8b   : > { %3058 = vmatmul.mubr.msk.bf16.gmra.mrb[60].mxu1 %vm646_vm0, %v3138_v1 }
  0xe5   : > { %v2935_v3 = vpop.f32.mrb[0].mxu0 }
  0xe6   : > { %v882_v4 = vadd.f32 %v2935_v3, %v3323_v2  ;;  %v2999_v5 = vpop.f32.mrb[0].mxu1  ;;  %v873_v6 = vpop.f32.mrb[1].mxu0 }
  0xe7   : > { %v1138_v7 = vadd.f32 %v2999_v5, %v3323_v2  ;;  %v874_v8 = vadd.f32 %v3323_v2, %v873_v6  ;;  %v1129_v9 = vpop.f32.mrb[1].mxu1  ;;  %v2936_v10 = vpop.f32.mrb[2].mxu0 }
  0xe8   : > { %vm1386_vm2 = vcmp.gt.f32.partialorder %v882_v4, 0.0  ;;  %v1514_v11 = vmul.f32 0.2, %v882_v4  ;;  %v1130_v12 = vadd.f32 %v3323_v2, %v1129_v9  ;;  %v885_v13 = vadd.f32 %v2936_v10, %v3323_v2  ;;  %v3000_v14 = vpop.f32.mrb[2].mxu1  ;;  %v876_v15 = vpop.f32.mrb[3].mxu0 }
  0xe9   : > { %vm1450_vm3 = vcmp.gt.f32.partialorder %v1138_v7, 0.0  ;;  %v1578_v16 = vmul.f32 0.2, %v1138_v7  ;;  %vm1384_vm4 = vcmp.gt.f32.partialorder %v874_v8, 0.0  ;;  %v1512_v17 = vmul.f32 0.2, %v874_v8 }
  0xea   : > { %v1642_v18 = vsel %vm1386_vm2, %v882_v4, %v1514_v11  ;;  %vm1448_vm5 = vcmp.gt.f32.partialorder %v1130_v12, 0.0  ;;  %v1576_v19 = vmul.f32 0.2, %v1130_v12  ;;  %vm1387_vm6 = vcmp.gt.f32.partialorder %v885_v13, 0.0  ;;  %v1132_v20 = vpop.f32.mrb[3].mxu1 }
  0xeb   : > { %v2737_v21 = vpack.c.bf16 %v1642_v18, %v1642_v18  ;;  %v1706_v22 = vsel %vm1450_vm3, %v1138_v7, %v1578_v16  ;;  %v1640_v23 = vsel %vm1384_vm4, %v874_v8, %v1512_v17  ;;  %v1515_v24 = vmul.f32 0.2, %v885_v13 }
  0xec   : > { %v2801_v25 = vpack.c.bf16 %v1706_v22, %v1706_v22  ;;  %v2735_v26 = vpack.c.bf16 %v1640_v23, %v1640_v23  ;;  %v1704_v27 = vsel %vm1448_vm5, %v1130_v12, %v1576_v19  ;;  %v1141_v28 = vadd.f32 %v3000_v14, %v3323_v2 }
  0xed   : > { %2283 = vst.msk [vmem:[%s3335_s27 + $0x8] sm:$0xf] %vm2280_vm1, %v2737_v21  ;;  %v2799_v29 = vpack.c.bf16 %v1704_v27, %v1704_v27  ;;  %v1643_v30 = vsel %vm1387_vm6, %v885_v13, %v1515_v24  ;;  %v877_v31 = vadd.f32 %v3323_v2, %v876_v15  ;;  %v1133_v32 = vadd.f32 %v3323_v2, %v1132_v20  ;;  %v2939_v33 = vpop.f32.mrb[4].mxu0 }
  0xee   : > { %2347 = vst.msk [vmem:[%s3335_s27 + $0x108] sm:$0xf] %vm2280_vm1, %v2801_v25  ;;  %2281 = vst.msk [vmem:[%s3335_s27] sm:$0xf] %vm2280_vm1, %v2735_v26  ;;  %v2738_v34 = vpack.c.bf16 %v1643_v30, %v1643_v30  ;;  %vm1451_vm7 = vcmp.gt.f32.partialorder %v1141_v28, 0.0  ;;  %v898_v36 = vadd.f32 %v2939_v33, %v3323_v2  ;;  %v3003_v37 = vpop.f32.mrb[4].mxu1 }
  0xef   : > { %v1579_v35 = vmul.f32 0.2, %v1141_v28  ;;  %v889_v38 = vpop.f32.mrb[5].mxu0  ;;  %2345 = vst.msk [vmem:[%s3335_s27 + $0x100] sm:$0xf] %vm2280_vm1, %v2799_v29  ;;  %vm1385_vm8 = vcmp.gt.f32.partialorder %v877_v31, 0.0  ;;  %v1154_v43 = vadd.f32 %v3003_v37, %v3323_v2 }
  0xf0   : > { %v1513_v39 = vmul.f32 0.2, %v877_v31  ;;  %vm1449_vm9 = vcmp.gt.f32.partialorder %v1133_v32, 0.0  ;;  %v1577_v40 = vmul.f32 0.2, %v1133_v32  ;;  %vm1390_vm10 = vcmp.gt.f32.partialorder %v898_v36, 0.0 }
  0xf1   : > { %2284 = vst.msk [vmem:[%s3335_s27 + $0xc] sm:$0xf] %vm2280_vm1, %v2738_v34  ;;  %v1707_v41 = vsel %vm1451_vm7, %v1141_v28, %v1579_v35  ;;  %v1518_v42 = vmul.f32 0.2, %v898_v36  ;;  %v1145_v44 = vpop.f32.mrb[5].mxu1  ;;  %v2940_v45 = vpop.f32.mrb[6].mxu0  ;;  %v890_v49 = vadd.f32 %v3323_v2, %v889_v38 }
  0xf2   : > { %v2802_v46 = vpack.c.bf16 %v1707_v41, %v1707_v41  ;;  %v1641_v47 = vsel %vm1385_vm8, %v877_v31, %v1513_v39  ;;  %v1705_v48 = vsel %vm1449_vm9, %v1133_v32, %v1577_v40  ;;  %v3004_v50 = vpop.f32.mrb[6].mxu1  ;;  %v892_v51 = vpop.f32.mrb[7].mxu0  ;;  %vm1454_vm11 = vcmp.gt.f32.partialorder %v1154_v43, 0.0 }
  0xf3   : > { %v2736_v52 = vpack.c.bf16 %v1641_v47, %v1641_v47  ;;  %v2800_v53 = vpack.c.bf16 %v1705_v48, %v1705_v48  ;;  %v1646_v54 = vsel %vm1390_vm10, %v898_v36, %v1518_v42  ;;  %v1148_v55 = vpop.f32.mrb[7].mxu1  ;;  %v1582_v57 = vmul.f32 0.2, %v1154_v43 }
  0xf4   : > { %2348 = vst.msk [vmem:[%s3335_s27 + $0x10c] sm:$0xf] %vm2280_vm1, %v2802_v46  ;;  %v2741_v56 = vpack.c.bf16 %v1646_v54, %v1646_v54  ;;  %vm1388_vm12 = vcmp.gt.f32.partialorder %v890_v49, 0.0  ;;  %v1516_v58 = vmul.f32 0.2, %v890_v49  ;;  %v1146_v59 = vadd.f32 %v3323_v2, %v1145_v44 }
  0xf5   : > { %2282 = vst.msk [vmem:[%s3335_s27 + $0x4] sm:$0xf] %vm2280_vm1, %v2736_v52  ;;  %2346 = vst.msk [vmem:[%s3335_s27 + $0x104] sm:$0xf] %vm2280_vm1, %v2800_v53  ;;  %v901_v60 = vadd.f32 %v2940_v45, %v3323_v2  ;;  %v1157_v61 = vadd.f32 %v3004_v50, %v3323_v2  ;;  %v893_v62 = vadd.f32 %v3323_v2, %v892_v51  ;;  %v2943_v3 = vpop.f32.mrb[8].mxu0 }
  0xf6   : > { %2287 = vst.msk [vmem:[%s3335_s27 + $0x18] sm:$0xf] %vm2280_vm1, %v2741_v56  ;;  %v1710_v63 = vsel %vm1454_vm11, %v1154_v43, %v1582_v57  ;;  %v1644_v0 = vsel %vm1388_vm12, %v890_v49, %v1516_v58  ;;  %v1149_v1 = vadd.f32 %v3323_v2, %v1148_v55  ;;  %vm1452_vm13 = vcmp.gt.f32.partialorder %v1146_v59, 0.0  ;;  %v3007_v7 = vpop.f32.mrb[8].mxu1  ;;  %v905_v8 = vpop.f32.mrb[9].mxu0 }
  0xf7   : > { %v2805_v4 = vpack.c.bf16 %v1710_v63, %v1710_v63  ;;  %v2739_v5 = vpack.c.bf16 %v1644_v0, %v1644_v0  ;;  %v1580_v6 = vmul.f32 0.2, %v1146_v59  ;;  %vm1391_vm14 = vcmp.gt.f32.partialorder %v901_v60, 0.0  ;;  %v1161_v13 = vpop.f32.mrb[9].mxu1  ;;  %v2944_v14 = vpop.f32.mrb[10].mxu0 }
  0xf8   : > { %v1519_v9 = vmul.f32 0.2, %v901_v60  ;;  %vm1455_vm15 = vcmp.gt.f32.partialorder %v1157_v61, 0.0  ;;  %v1583_v10 = vmul.f32 0.2, %v1157_v61  ;;  %vm1389_vm0 = vcmp.gt.f32.partialorder %v893_v62, 0.0 }
  0xf9   : > { %2351 = vst.msk [vmem:[%s3335_s27 + $0x118] sm:$0xf] %vm2280_vm1, %v2805_v4  ;;  %2285 = vst.msk [vmem:[%s3335_s27 + $0x10] sm:$0xf] %vm2280_vm1, %v2739_v5  ;;  %v1708_v11 = vsel %vm1452_vm13, %v1146_v59, %v1580_v6  ;;  %v1517_v12 = vmul.f32 0.2, %v893_v62  ;;  %v914_v24 = vadd.f32 %v2943_v3, %v3323_v2  ;;  %v1170_v28 = vadd.f32 %v3007_v7, %v3323_v2 }
  0xfa   : > { %vm1453_vm2 = vcmp.gt.f32.partialorder %v1149_v1, 0.0  ;;  %v2803_v15 = vpack.c.bf16 %v1708_v11, %v1708_v11  ;;  %v1647_v16 = vsel %vm1391_vm14, %v901_v60, %v1519_v9  ;;  %v1711_v17 = vsel %vm1455_vm15, %v1157_v61, %v1583_v10  ;;  %v3008_v19 = vpop.f32.mrb[10].mxu1  ;;  %v908_v20 = vpop.f32.mrb[11].mxu0 }
  0xfb   : > { %v1581_v18 = vmul.f32 0.2, %v1149_v1  ;;  %v2742_v21 = vpack.c.bf16 %v1647_v16, %v1647_v16  ;;  %v2806_v22 = vpack.c.bf16 %v1711_v17, %v1711_v17  ;;  %v1645_v23 = vsel %vm1389_vm0, %v893_v62, %v1517_v12  ;;  %v1164_v25 = vpop.f32.mrb[11].mxu1 }
  0xfc   : > { %2349 = vst.msk [vmem:[%s3335_s27 + $0x110] sm:$0xf] %vm2280_vm1, %v2803_v15  ;;  %v2740_v26 = vpack.c.bf16 %v1645_v23, %v1645_v23  ;;  %v906_v29 = vadd.f32 %v3323_v2, %v905_v8  ;;  %vm1394_vm3 = vcmp.gt.f32.partialorder %v914_v24, 0.0  ;;  %v1522_v31 = vmul.f32 0.2, %v914_v24 }
  0xfd   : > { %v1709_v27 = vsel %vm1453_vm2, %v1149_v1, %v1581_v18  ;;  %2288 = vst.msk [vmem:[%s3335_s27 + $0x1c] sm:$0xf] %vm2280_vm1, %v2742_v21  ;;  %2352 = vst.msk [vmem:[%s3335_s27 + $0x11c] sm:$0xf] %vm2280_vm1, %v2806_v22  ;;  %v1162_v32 = vadd.f32 %v3323_v2, %v1161_v13  ;;  %vm1458_vm4 = vcmp.gt.f32.partialorder %v1170_v28, 0.0  ;;  %v917_v37 = vadd.f32 %v2944_v14, %v3323_v2  ;;  %v2947_v38 = vpop.f32.mrb[12].mxu0 }
  0xfe   : > { %v2804_v30 = vpack.c.bf16 %v1709_v27, %v1709_v27  ;;  %2286 = vst.msk [vmem:[%s3335_s27 + $0x14] sm:$0xf] %vm2280_vm1, %v2740_v26  ;;  %v1586_v33 = vmul.f32 0.2, %v1170_v28  ;;  %vm1392_vm5 = vcmp.gt.f32.partialorder %v906_v29, 0.0  ;;  %v1650_v35 = vsel %vm1394_vm3, %v914_v24, %v1522_v31  ;;  %v3011_v39 = vpop.f32.mrb[12].mxu1 }
  0xff   : > { %v1520_v34 = vmul.f32 0.2, %v906_v29  ;;  %vm1456_vm6 = vcmp.gt.f32.partialorder %v1162_v32, 0.0  ;;  %v1584_v36 = vmul.f32 0.2, %v1162_v32  ;;  %v2745_v40 = vpack.c.bf16 %v1650_v35, %v1650_v35  ;;  %v921_v44 = vpop.f32.mrb[13].mxu0 }
 0x100   : > { %2350 = vst.msk [vmem:[%s3335_s27 + $0x114] sm:$0xf] %vm2280_vm1, %v2804_v30  ;;  %v1714_v41 = vsel %vm1458_vm4, %v1170_v28, %v1586_v33  ;;  %v1173_v43 = vadd.f32 %v3008_v19, %v3323_v2  ;;  %v1177_v45 = vpop.f32.mrb[13].mxu1  ;;  %vm1395_vm7 = vcmp.gt.f32.partialorder %v917_v37, 0.0  ;;  %v2948_v49 = vpop.f32.mrb[14].mxu0  ;;  %v909_v55 = vadd.f32 %v3323_v2, %v908_v20 }
 0x101   : > { %v1648_v42 = vsel %vm1392_vm5, %v906_v29, %v1520_v34  ;;  %v2809_v46 = vpack.c.bf16 %v1714_v41, %v1714_v41  ;;  %v1712_v48 = vsel %vm1456_vm6, %v1162_v32, %v1584_v36  ;;  %v3012_v50 = vpop.f32.mrb[14].mxu1  ;;  %2291 = vst.msk [vmem:[%s3335_s27 + $0x28] sm:$0xf] %vm2280_vm1, %v2745_v40  ;;  %v1523_v52 = vmul.f32 0.2, %v917_v37  ;;  %v924_v54 = vpop.f32.mrb[15].mxu0 }
 0x102   : > { %v2743_v47 = vpack.c.bf16 %v1648_v42, %v1648_v42  ;;  %v2807_v51 = vpack.c.bf16 %v1712_v48, %v1712_v48  ;;  %vm1459_vm8 = vcmp.gt.f32.partialorder %v1173_v43, 0.0  ;;  %v1587_v53 = vmul.f32 0.2, %v1173_v43  ;;  %v1180_v59 = vpop.f32.mrb[15].mxu1 }
 0x103   : > { %2355 = vst.msk [vmem:[%s3335_s27 + $0x128] sm:$0xf] %vm2280_vm1, %v2809_v46  ;;  %v1165_v56 = vadd.f32 %v3323_v2, %v1164_v25  ;;  %v930_v57 = vadd.f32 %v2947_v38, %v3323_v2  ;;  %v1186_v58 = vadd.f32 %v3011_v39, %v3323_v2  ;;  %v1651_v60 = vsel %vm1395_vm7, %v917_v37, %v1523_v52 }
 0x104   : > { %2289 = vst.msk [vmem:[%s3335_s27 + $0x20] sm:$0xf] %vm2280_vm1, %v2743_v47  ;;  %2353 = vst.msk [vmem:[%s3335_s27 + $0x120] sm:$0xf] %vm2280_vm1, %v2807_v51  ;;  %v1715_v61 = vsel %vm1459_vm8, %v1173_v43, %v1587_v53  ;;  %v922_v62 = vadd.f32 %v3323_v2, %v921_v44  ;;  %v1178_v63 = vadd.f32 %v3323_v2, %v1177_v45  ;;  %vm1393_vm9 = vcmp.gt.f32.partialorder %v909_v55, 0.0 }
 0x105   : > { %v2746_v0 = vpack.c.bf16 %v1651_v60, %v1651_v60  ;;  %v2810_v1 = vpack.c.bf16 %v1715_v61, %v1715_v61  ;;  %v1521_v3 = vmul.f32 0.2, %v909_v55  ;;  %vm1457_vm10 = vcmp.gt.f32.partialorder %v1165_v56, 0.0  ;;  %v2951_v8 = vpop.f32.mrb[16].mxu0 }
 0x106   : > { %v1585_v4 = vmul.f32 0.2, %v1165_v56  ;;  %vm1398_vm11 = vcmp.gt.f32.partialorder %v930_v57, 0.0  ;;  %v1526_v5 = vmul.f32 0.2, %v930_v57  ;;  %vm1462_vm12 = vcmp.gt.f32.partialorder %v1186_v58, 0.0 }
 0x107   : > { %2292 = vst.msk [vmem:[%s3335_s27 + $0x2c] sm:$0xf] %vm2280_vm1, %v2746_v0  ;;  %2356 = vst.msk [vmem:[%s3335_s27 + $0x12c] sm:$0xf] %vm2280_vm1, %v2810_v1  ;;  %v1649_v6 = vsel %vm1393_vm9, %v909_v55, %v1521_v3  ;;  %v1590_v7 = vmul.f32 0.2, %v1186_v58  ;;  %v933_v24 = vadd.f32 %v2948_v49, %v3323_v2  ;;  %v1189_v28 = vadd.f32 %v3012_v50, %v3323_v2 }
 0x108   : > { %vm1396_vm13 = vcmp.gt.f32.partialorder %v922_v62, 0.0  ;;  %v3015_v9 = vpop.f32.mrb[16].mxu1  ;;  %v2744_v10 = vpack.c.bf16 %v1649_v6, %v1649_v6  ;;  %v1713_v11 = vsel %vm1457_vm10, %v1165_v56, %v1585_v4  ;;  %v1654_v12 = vsel %vm1398_vm11, %v930_v57, %v1526_v5  ;;  %v937_v14 = vpop.f32.mrb[17].mxu0 }
 0x109   : > { %v1524_v13 = vmul.f32 0.2, %v922_v62  ;;  %v1193_v15 = vpop.f32.mrb[17].mxu1  ;;  %v2808_v16 = vpack.c.bf16 %v1713_v11, %v1713_v11  ;;  %v2749_v17 = vpack.c.bf16 %v1654_v12, %v1654_v12  ;;  %v1718_v18 = vsel %vm1462_vm12, %v1186_v58, %v1590_v7  ;;  %v2952_v19 = vpop.f32.mrb[18].mxu0 }
 0x10a   : > { %vm1460_vm14 = vcmp.gt.f32.partialorder %v1178_v63, 0.0  ;;  %v3016_v20 = vpop.f32.mrb[18].mxu1  ;;  %2290 = vst.msk [vmem:[%s3335_s27 + $0x24] sm:$0xf] %vm2280_vm1, %v2744_v10  ;;  %v2813_v21 = vpack.c.bf16 %v1718_v18, %v1718_v18  ;;  %v1588_v23 = vmul.f32 0.2, %v1178_v63  ;;  %v925_v29 = vadd.f32 %v3323_v2, %v924_v54 }
 0x10b   : > { %v1652_v22 = vsel %vm1396_vm13, %v922_v62, %v1524_v13  ;;  %v940_v25 = vpop.f32.mrb[19].mxu0  ;;  %v3410_v26 = vpop.f32.mrb[19].mxu1  ;;  %2354 = vst.msk [vmem:[%s3335_s27 + $0x124] sm:$0xf] %vm2280_vm1, %v2808_v16  ;;  %2295 = vst.msk [vmem:[%s3335_s27 + $0x38] sm:$0xf] %vm2280_vm1, %v2749_v17  ;;  %v1181_v30 = vadd.f32 %v3323_v2, %v1180_v59  ;;  %v946_v33 = vadd.f32 %v2951_v8, %v3323_v2 }
 0x10c   : > { %v2747_v27 = vpack.c.bf16 %v1652_v22, %v1652_v22  ;;  %2359 = vst.msk [vmem:[%s3335_s27 + $0x138] sm:$0xf] %vm2280_vm1, %v2813_v21  ;;  %v1716_v31 = vsel %vm1460_vm14, %v1178_v63, %v1588_v23  ;;  %vm1399_vm15 = vcmp.gt.f32.partialorder %v933_v24, 0.0  ;;  %v1527_v32 = vmul.f32 0.2, %v933_v24 }
 0x10d   : > { %v2811_v34 = vpack.c.bf16 %v1716_v31, %v1716_v31  ;;  %vm1463_vm0 = vcmp.gt.f32.partialorder %v1189_v28, 0.0  ;;  %v1591_v35 = vmul.f32 0.2, %v1189_v28  ;;  %vm1397_vm2 = vcmp.gt.f32.partialorder %v925_v29, 0.0  ;;  %v2955_v39 = vpop.f32.mrb[20].mxu0 }
 0x10e   : > { %2293 = vst.msk [vmem:[%s3335_s27 + $0x30] sm:$0xf] %vm2280_vm1, %v2747_v27  ;;  %v1655_v36 = vsel %vm1399_vm15, %v933_v24, %v1527_v32  ;;  %v1525_v37 = vmul.f32 0.2, %v925_v29  ;;  %vm1461_vm3 = vcmp.gt.f32.partialorder %v1181_v30, 0.0  ;;  %vm1402_vm4 = vcmp.gt.f32.partialorder %v946_v33, 0.0 }
 0x10f   : > { %v1589_v38 = vmul.f32 0.2, %v1181_v30  ;;  %2357 = vst.msk [vmem:[%s3335_s27 + $0x130] sm:$0xf] %vm2280_vm1, %v2811_v34  ;;  %v2750_v40 = vpack.c.bf16 %v1655_v36, %v1655_v36  ;;  %v1719_v41 = vsel %vm1463_vm0, %v1189_v28, %v1591_v35  ;;  %v1530_v42 = vmul.f32 0.2, %v946_v33 }
 0x110   : > { %v3019_v43 = vpop.f32.mrb[20].mxu1  ;;  %v953_v44 = vpop.f32.mrb[21].mxu0  ;;  %v2814_v45 = vpack.c.bf16 %v1719_v41, %v1719_v41  ;;  %v1653_v46 = vsel %vm1397_vm2, %v925_v29, %v1525_v37  ;;  %v1202_v48 = vadd.f32 %v3015_v9, %v3323_v2  ;;  %v938_v54 = vadd.f32 %v3323_v2, %v937_v14 }
 0x111   : > { %v1717_v47 = vsel %vm1461_vm3, %v1181_v30, %v1589_v38  ;;  %v3428_v49 = vpop.f32.mrb[21].mxu1  ;;  %v3430_v50 = vpop.f32.mrb[22].mxu0  ;;  %2296 = vst.msk [vmem:[%s3335_s27 + $0x3c] sm:$0xf] %vm2280_vm1, %v2750_v40  ;;  %v2748_v51 = vpack.c.bf16 %v1653_v46, %v1653_v46  ;;  %v1658_v53 = vsel %vm1402_vm4, %v946_v33, %v1530_v42  ;;  %v1194_v59 = vadd.f32 %v3323_v2, %v1193_v15 }
 0x112   : > { %v2812_v52 = vpack.c.bf16 %v1717_v47, %v1717_v47  ;;  %v3435_v55 = vpop.f32.mrb[22].mxu1  ;;  %v3437_v56 = vpop.f32.mrb[23].mxu0  ;;  %2360 = vst.msk [vmem:[%s3335_s27 + $0x13c] sm:$0xf] %vm2280_vm1, %v2814_v45  ;;  %v2753_v57 = vpack.c.bf16 %v1658_v53, %v1658_v53  ;;  %vm1466_vm5 = vcmp.gt.f32.partialorder %v1202_v48, 0.0  ;;  %vm1400_vm6 = vcmp.gt.f32.partialorder %v938_v54, 0.0 }
 0x113   : > { %v1594_v58 = vmul.f32 0.2, %v1202_v48  ;;  %v3442_v60 = vpop.f32.mrb[23].mxu1  ;;  %2294 = vst.msk [vmem:[%s3335_s27 + $0x34] sm:$0xf] %vm2280_vm1, %v2748_v51  ;;  %v949_v62 = vadd.f32 %v2952_v19, %v3323_v2  ;;  %v1205_v63 = vadd.f32 %v3016_v20, %v3323_v2  ;;  %vm1464_vm7 = vcmp.gt.f32.partialorder %v1194_v59, 0.0 }
 0x114   : > { %2358 = vst.msk [vmem:[%s3335_s27 + $0x134] sm:$0xf] %vm2280_vm1, %v2812_v52  ;;  %v1528_v61 = vmul.f32 0.2, %v938_v54  ;;  %2299 = vst.msk [vmem:[%s3335_s27 + $0x48] sm:$0xf] %vm2280_vm1, %v2753_v57  ;;  %v941_v3 = vadd.f32 %v3323_v2, %v940_v25  ;;  %v1197_v18 = vadd.f32 %v3323_v2, %v3410_v26  ;;  %v962_v19 = vadd.f32 %v2955_v39, %v3323_v2 }
 0x115   : > { %v1722_v0 = vsel %vm1466_vm5, %v1202_v48, %v1594_v58  ;;  %v1592_v1 = vmul.f32 0.2, %v1194_v59  ;;  %vm1403_vm8 = vcmp.gt.f32.partialorder %v949_v62, 0.0  ;;  %v1531_v6 = vmul.f32 0.2, %v949_v62  ;;  %v3453_v10 = vpop.f32.mrb[24].mxu0 }
 0x116   : > { %v2817_v4 = vpack.c.bf16 %v1722_v0, %v1722_v0  ;;  %v1656_v5 = vsel %vm1400_vm6, %v938_v54, %v1528_v61  ;;  %vm1467_vm9 = vcmp.gt.f32.partialorder %v1205_v63, 0.0  ;;  %v1595_v9 = vmul.f32 0.2, %v1205_v63  ;;  %v3023_v14 = vpop.f32.mrb[24].mxu1  ;;  %v3457_v15 = vpop.f32.mrb[25].mxu0 }
 0x117   : > { %v2751_v7 = vpack.c.bf16 %v1656_v5, %v1656_v5  ;;  %v1720_v8 = vsel %vm1464_vm7, %v1194_v59, %v1592_v1  ;;  %v1659_v12 = vsel %vm1403_vm8, %v949_v62, %v1531_v6  ;;  %vm1401_vm10 = vcmp.gt.f32.partialorder %v941_v3, 0.0  ;;  %v3464_v20 = vpop.f32.mrb[25].mxu1  ;;  %v3466_v21 = vpop.f32.mrb[26].mxu0 }
 0x118   : > { %2363 = vst.msk [vmem:[%s3335_s27 + $0x148] sm:$0xf] %vm2280_vm1, %v2817_v4  ;;  %v2815_v11 = vpack.c.bf16 %v1720_v8, %v1720_v8  ;;  %v1529_v13 = vmul.f32 0.2, %v941_v3  ;;  %v2754_v16 = vpack.c.bf16 %v1659_v12, %v1659_v12  ;;  %v1723_v17 = vsel %vm1467_vm9, %v1205_v63, %v1595_v9  ;;  %v3472_v27 = vpop.f32.mrb[26].mxu1  ;;  %v3474_v28 = vpop.f32.mrb[27].mxu0 }
 0x119   : > { %2297 = vst.msk [vmem:[%s3335_s27 + $0x40] sm:$0xf] %vm2280_vm1, %v2751_v7  ;;  %v2818_v22 = vpack.c.bf16 %v1723_v17, %v1723_v17  ;;  %v1218_v24 = vadd.f32 %v3019_v43, %v3323_v2  ;;  %v954_v25 = vadd.f32 %v3323_v2, %v953_v44  ;;  %vm1465_vm11 = vcmp.gt.f32.partialorder %v1197_v18, 0.0  ;;  %v3478_v30 = vpop.f32.mrb[27].mxu1 }
 0x11a   : > { %2361 = vst.msk [vmem:[%s3335_s27 + $0x140] sm:$0xf] %vm2280_vm1, %v2815_v11  ;;  %v1657_v23 = vsel %vm1401_vm10, %v941_v3, %v1529_v13  ;;  %2300 = vst.msk [vmem:[%s3335_s27 + $0x4c] sm:$0xf] %vm2280_vm1, %v2754_v16  ;;  %v1593_v29 = vmul.f32 0.2, %v1197_v18  ;;  %v1210_v35 = vadd.f32 %v3323_v2, %v3428_v49  ;;  %v965_v36 = vadd.f32 %v3430_v50, %v3323_v2 }
 0x11b   : > { %v2752_v26 = vpack.c.bf16 %v1657_v23, %v1657_v23  ;;  %vm1406_vm12 = vcmp.gt.f32.partialorder %v962_v19, 0.0  ;;  %2364 = vst.msk [vmem:[%s3335_s27 + $0x14c] sm:$0xf] %vm2280_vm1, %v2818_v22  ;;  %v1534_v31 = vmul.f32 0.2, %v962_v19  ;;  %vm1470_vm13 = vcmp.gt.f32.partialorder %v1218_v24, 0.0 }
 0x11c   : > { %v1598_v32 = vmul.f32 0.2, %v1218_v24  ;;  %vm1404_vm14 = vcmp.gt.f32.partialorder %v954_v25, 0.0  ;;  %v1721_v33 = vsel %vm1465_vm11, %v1197_v18, %v1593_v29  ;;  %v1532_v34 = vmul.f32 0.2, %v954_v25 }
 0x11d   : > { %2298 = vst.msk [vmem:[%s3335_s27 + $0x44] sm:$0xf] %vm2280_vm1, %v2752_v26  ;;  %v2816_v37 = vpack.c.bf16 %v1721_v33, %v1721_v33  ;;  %v1662_v38 = vsel %vm1406_vm12, %v962_v19, %v1534_v31  ;;  %v1221_v40 = vadd.f32 %v3435_v55, %v3323_v2  ;;  %vm1468_vm15 = vcmp.gt.f32.partialorder %v1210_v35, 0.0  ;;  %v3490_v44 = vpop.f32.mrb[28].mxu0 }
 0x11e   : > { %v1726_v39 = vsel %vm1470_vm13, %v1218_v24, %v1598_v32  ;;  %v2757_v41 = vpack.c.bf16 %v1662_v38, %v1662_v38  ;;  %v1660_v43 = vsel %vm1404_vm14, %v954_v25, %v1532_v34  ;;  %v1596_v46 = vmul.f32 0.2, %v1210_v35  ;;  %v3494_v48 = vpop.f32.mrb[28].mxu1  ;;  %v3504_v52 = vpop.f32.mrb[29].mxu0 }
 0x11f   : > { %v2821_v42 = vpack.c.bf16 %v1726_v39, %v1726_v39  ;;  %2362 = vst.msk [vmem:[%s3335_s27 + $0x144] sm:$0xf] %vm2280_vm1, %v2816_v37  ;;  %v2755_v45 = vpack.c.bf16 %v1660_v43, %v1660_v43  ;;  %vm1407_vm0 = vcmp.gt.f32.partialorder %v965_v36, 0.0  ;;  %v1535_v47 = vmul.f32 0.2, %v965_v36  ;;  %v3506_v53 = vpop.f32.mrb[29].mxu1 }
 0x120   : > { %2303 = vst.msk [vmem:[%s3335_s27 + $0x58] sm:$0xf] %vm2280_vm1, %v2757_v41  ;;  %vm1471_vm2 = vcmp.gt.f32.partialorder %v1221_v40, 0.0  ;;  %v1599_v49 = vmul.f32 0.2, %v1221_v40  ;;  %v957_v50 = vadd.f32 %v3323_v2, %v3437_v56  ;;  %v1213_v51 = vadd.f32 %v3323_v2, %v3442_v60  ;;  %v3514_v56 = vpop.f32.mrb[30].mxu0 }
 0x121   : > { %2367 = vst.msk [vmem:[%s3335_s27 + $0x158] sm:$0xf] %vm2280_vm1, %v2821_v42  ;;  %2301 = vst.msk [vmem:[%s3335_s27 + $0x50] sm:$0xf] %vm2280_vm1, %v2755_v45  ;;  %v1724_v54 = vsel %vm1468_vm15, %v1210_v35, %v1596_v46  ;;  %v1663_v55 = vsel %vm1407_vm0, %v965_v36, %v1535_v47  ;;  %v978_v57 = vadd.f32 %v3453_v10, %v3323_v2  ;;  %v3516_v59 = vpop.f32.mrb[30].mxu1  ;;  %v3518_v63 = vpop.f32.mrb[31].mxu0 }
 0x122   : > { %v1234_v58 = vadd.f32 %v3023_v14, %v3323_v2  ;;  %v2819_v60 = vpack.c.bf16 %v1724_v54, %v1724_v54  ;;  %v2758_v61 = vpack.c.bf16 %v1663_v55, %v1663_v55  ;;  %v1727_v62 = vsel %vm1471_vm2, %v1221_v40, %v1599_v49  ;;  %v3520_v0 = vpop.f32.mrb[31].mxu1 }
 0x123   : > { %vm1405_vm3 = vcmp.gt.f32.partialorder %v957_v50, 0.0  ;;  %v2822_v1 = vpack.c.bf16 %v1727_v62, %v1727_v62  ;;  %v1533_v3 = vmul.f32 0.2, %v957_v50  ;;  %vm1469_vm4 = vcmp.gt.f32.partialorder %v1213_v51, 0.0 }
 0x124   : > { %v1597_v4 = vmul.f32 0.2, %v1213_v51  ;;  %2365 = vst.msk [vmem:[%s3335_s27 + $0x150] sm:$0xf] %vm2280_vm1, %v2819_v60  ;;  %2304 = vst.msk [vmem:[%s3335_s27 + $0x5c] sm:$0xf] %vm2280_vm1, %v2758_v61  ;;  %v970_v9 = vadd.f32 %v3323_v2, %v3457_v15  ;;  %v1226_v10 = vadd.f32 %v3323_v2, %v3464_v20  ;;  %v981_v20 = vadd.f32 %v3466_v21, %v3323_v2 }
 0x125   : > { %vm1410_vm5 = vcmp.gt.f32.partialorder %v978_v57, 0.0  ;;  %v1538_v5 = vmul.f32 0.2, %v978_v57  ;;  %vm1474_vm6 = vcmp.gt.f32.partialorder %v1234_v58, 0.0  ;;  %v1602_v6 = vmul.f32 0.2, %v1234_v58 }
 0x126   : > { %2368 = vst.msk [vmem:[%s3335_s27 + $0x15c] sm:$0xf] %vm2280_vm1, %v2822_v1  ;;  %v1661_v7 = vsel %vm1405_vm3, %v957_v50, %v1533_v3  ;;  %v1725_v8 = vsel %vm1469_vm4, %v1213_v51, %v1597_v4  ;;  %v3532_v16 = vpop.f32.mrb[32].mxu0  ;;  %vm1408_vm7 = vcmp.gt.f32.partialorder %v970_v9, 0.0  ;;  %v1536_v19 = vmul.f32 0.2, %v970_v9 }
 0x127   : > { %v2756_v11 = vpack.c.bf16 %v1661_v7, %v1661_v7  ;;  %v2820_v12 = vpack.c.bf16 %v1725_v8, %v1725_v8  ;;  %v1666_v13 = vsel %vm1410_vm5, %v978_v57, %v1538_v5  ;;  %v1730_v14 = vsel %vm1474_vm6, %v1234_v58, %v1602_v6  ;;  %v3534_v22 = vpop.f32.mrb[32].mxu1  ;;  %v3536_v23 = vpop.f32.mrb[33].mxu0 }
 0x128   : > { %v2761_v17 = vpack.c.bf16 %v1666_v13, %v1666_v13  ;;  %v2825_v18 = vpack.c.bf16 %v1730_v14, %v1730_v14  ;;  %vm1472_vm8 = vcmp.gt.f32.partialorder %v1226_v10, 0.0  ;;  %v1600_v15 = vmul.f32 0.2, %v1226_v10  ;;  %v3546_v25 = vpop.f32.mrb[33].mxu1  ;;  %v3548_v26 = vpop.f32.mrb[34].mxu0 }
 0x129   : > { %2302 = vst.msk [vmem:[%s3335_s27 + $0x54] sm:$0xf] %vm2280_vm1, %v2756_v11  ;;  %2366 = vst.msk [vmem:[%s3335_s27 + $0x154] sm:$0xf] %vm2280_vm1, %v2820_v12  ;;  %v1237_v24 = vadd.f32 %v3472_v27, %v3323_v2  ;;  %v1664_v29 = vsel %vm1408_vm7, %v970_v9, %v1536_v19  ;;  %v973_v31 = vadd.f32 %v3323_v2, %v3474_v28  ;;  %v3560_v27 = vpop.f32.mrb[34].mxu1  ;;  %v3562_v33 = vpop.f32.mrb[35].mxu0 }
 0x12a   : > { %2307 = vst.msk [vmem:[%s3335_s27 + $0x68] sm:$0xf] %vm2280_vm1, %v2761_v17  ;;  %2371 = vst.msk [vmem:[%s3335_s27 + $0x168] sm:$0xf] %vm2280_vm1, %v2825_v18  ;;  %v1229_v32 = vadd.f32 %v3323_v2, %v3478_v30  ;;  %v994_v21 = vadd.f32 %v3490_v44, %v3323_v2  ;;  %v2759_v34 = vpack.c.bf16 %v1664_v29, %v1664_v29  ;;  %vm1411_vm9 = vcmp.gt.f32.partialorder %v981_v20, 0.0  ;;  %v3564_v37 = vpop.f32.mrb[35].mxu1 }
 0x12b   : > { %v1728_v35 = vsel %vm1472_vm8, %v1226_v10, %v1600_v15  ;;  %v1539_v36 = vmul.f32 0.2, %v981_v20  ;;  %vm1475_vm10 = vcmp.gt.f32.partialorder %v1237_v24, 0.0  ;;  %v1603_v28 = vmul.f32 0.2, %v1237_v24 }
 0x12c   : > { %v2823_v38 = vpack.c.bf16 %v1728_v35, %v1728_v35  ;;  %vm1409_vm11 = vcmp.gt.f32.partialorder %v973_v31, 0.0  ;;  %2305 = vst.msk [vmem:[%s3335_s27 + $0x60] sm:$0xf] %vm2280_vm1, %v2759_v34  ;;  %v1537_v39 = vmul.f32 0.2, %v973_v31  ;;  %vm1473_vm12 = vcmp.gt.f32.partialorder %v1229_v32, 0.0 }
 0x12d   : > { %v1667_v30 = vsel %vm1411_vm9, %v981_v20, %v1539_v36  ;;  %v1601_v40 = vmul.f32 0.2, %v1229_v32  ;;  %v1731_v42 = vsel %vm1475_vm10, %v1237_v24, %v1603_v28  ;;  %vm1414_vm13 = vcmp.gt.f32.partialorder %v994_v21, 0.0  ;;  %v3572_v49 = vpop.f32.mrb[36].mxu0 }
 0x12e   : > { %2369 = vst.msk [vmem:[%s3335_s27 + $0x160] sm:$0xf] %vm2280_vm1, %v2823_v38  ;;  %v2762_v41 = vpack.c.bf16 %v1667_v30, %v1667_v30  ;;  %v1542_v43 = vmul.f32 0.2, %v994_v21  ;;  %v2826_v44 = vpack.c.bf16 %v1731_v42, %v1731_v42  ;;  %v1665_v45 = vsel %vm1409_vm11, %v973_v31, %v1537_v39  ;;  %v3578_v57 = vpop.f32.mrb[36].mxu1  ;;  %v3580_v58 = vpop.f32.mrb[37].mxu0 }
 0x12f   : > { %v1729_v46 = vsel %vm1473_vm12, %v1229_v32, %v1601_v40  ;;  %v1250_v47 = vadd.f32 %v3494_v48, %v3323_v2  ;;  %v2760_v50 = vpack.c.bf16 %v1665_v45, %v1665_v45  ;;  %v986_v55 = vadd.f32 %v3323_v2, %v3504_v52  ;;  %v3586_v62 = vpop.f32.mrb[37].mxu1  ;;  %v3588_v1 = vpop.f32.mrb[38].mxu0 }
 0x130   : > { %2308 = vst.msk [vmem:[%s3335_s27 + $0x6c] sm:$0xf] %vm2280_vm1, %v2762_v41  ;;  %v2824_v51 = vpack.c.bf16 %v1729_v46, %v1729_v46  ;;  %v1670_v54 = vsel %vm1414_vm13, %v994_v21, %v1542_v43  ;;  %2372 = vst.msk [vmem:[%s3335_s27 + $0x16c] sm:$0xf] %vm2280_vm1, %v2826_v44  ;;  %v1242_v61 = vadd.f32 %v3323_v2, %v3506_v53  ;;  %v3598_v5 = vpop.f32.mrb[38].mxu1  ;;  %v3600_v53 = vpop.f32.mrb[39].mxu0 }
 0x131   : > { %v2765_v48 = vpack.c.bf16 %v1670_v54, %v1670_v54  ;;  %vm1478_vm14 = vcmp.gt.f32.partialorder %v1250_v47, 0.0  ;;  %v1606_v60 = vmul.f32 0.2, %v1250_v47  ;;  %2306 = vst.msk [vmem:[%s3335_s27 + $0x64] sm:$0xf] %vm2280_vm1, %v2760_v50  ;;  %vm1412_vm15 = vcmp.gt.f32.partialorder %v986_v55, 0.0 }
 0x132   : > { %2370 = vst.msk [vmem:[%s3335_s27 + $0x164] sm:$0xf] %vm2280_vm1, %v2824_v51  ;;  %v1540_v52 = vmul.f32 0.2, %v986_v55  ;;  %v997_v3 = vadd.f32 %v3514_v56, %v3323_v2  ;;  %v1253_v4 = vadd.f32 %v3516_v59, %v3323_v2  ;;  %vm1476_vm0 = vcmp.gt.f32.partialorder %v1242_v61, 0.0  ;;  %v3606_v9 = vpop.f32.mrb[39].mxu1 }
 0x133   : > { %2311 = vst.msk [vmem:[%s3335_s27 + $0x78] sm:$0xf] %vm2280_vm1, %v2765_v48  ;;  %v1734_v6 = vsel %vm1478_vm14, %v1250_v47, %v1606_v60  ;;  %v1604_v7 = vmul.f32 0.2, %v1242_v61  ;;  %v989_v8 = vadd.f32 %v3323_v2, %v3518_v63  ;;  %v1245_v15 = vadd.f32 %v3323_v2, %v3520_v0 }
 0x134   : > { %v2829_v56 = vpack.c.bf16 %v1734_v6, %v1734_v6  ;;  %v1668_v10 = vsel %vm1412_vm15, %v986_v55, %v1540_v52  ;;  %vm1415_vm2 = vcmp.gt.f32.partialorder %v997_v3, 0.0  ;;  %v1543_v59 = vmul.f32 0.2, %v997_v3 }
 0x135   : > { %v2763_v11 = vpack.c.bf16 %v1668_v10, %v1668_v10  ;;  %v1732_v12 = vsel %vm1476_vm0, %v1242_v61, %v1604_v7  ;;  %vm1479_vm3 = vcmp.gt.f32.partialorder %v1253_v4, 0.0  ;;  %v1607_v13 = vmul.f32 0.2, %v1253_v4  ;;  %v3616_v24 = vpop.f32.mrb[40].mxu0 }
 0x136   : > { %2375 = vst.msk [vmem:[%s3335_s27 + $0x178] sm:$0xf] %vm2280_vm1, %v2829_v56  ;;  %v2827_v14 = vpack.c.bf16 %v1732_v12, %v1732_v12  ;;  %v1671_v17 = vsel %vm1415_vm2, %v997_v3, %v1543_v59  ;;  %vm1413_vm4 = vcmp.gt.f32.partialorder %v989_v8, 0.0  ;;  %v1541_v18 = vmul.f32 0.2, %v989_v8  ;;  %v3624_v34 = vpop.f32.mrb[40].mxu1 }
 0x137   : > { %2309 = vst.msk [vmem:[%s3335_s27 + $0x70] sm:$0xf] %vm2280_vm1, %v2763_v11  ;;  %v2766_v63 = vpack.c.bf16 %v1671_v17, %v1671_v17  ;;  %v1735_v19 = vsel %vm1479_vm3, %v1253_v4, %v1607_v13  ;;  %v1010_v20 = vadd.f32 %v3532_v16, %v3323_v2  ;;  %v1266_v32 = vadd.f32 %v3534_v22, %v3323_v2  ;;  %v3626_v0 = vpop.f32.mrb[41].mxu0  ;;  %v3630_v36 = vpop.f32.mrb[41].mxu1 }
 0x138   : > { %2373 = vst.msk [vmem:[%s3335_s27 + $0x170] sm:$0xf] %vm2280_vm1, %v2827_v14  ;;  %v2830_v29 = vpack.c.bf16 %v1735_v19, %v1735_v19  ;;  %v1669_v31 = vsel %vm1413_vm4, %v989_v8, %v1541_v18  ;;  %v1002_v21 = vadd.f32 %v3323_v2, %v3536_v23  ;;  %vm1477_vm5 = vcmp.gt.f32.partialorder %v1245_v15, 0.0  ;;  %v3632_v38 = vpop.f32.mrb[42].mxu0  ;;  %v3642_v41 = vpop.f32.mrb[42].mxu1 }
 0x139   : > { %2312 = vst.msk [vmem:[%s3335_s27 + $0x7c] sm:$0xf] %vm2280_vm1, %v2766_v63  ;;  %v2764_v16 = vpack.c.bf16 %v1669_v31, %v1669_v31  ;;  %v1605_v35 = vmul.f32 0.2, %v1245_v15  ;;  %vm1418_vm6 = vcmp.gt.f32.partialorder %v1010_v20, 0.0  ;;  %vm1482_vm7 = vcmp.gt.f32.partialorder %v1266_v32, 0.0 }
 0x13a   : > { %2376 = vst.msk [vmem:[%s3335_s27 + $0x17c] sm:$0xf] %vm2280_vm1, %v2830_v29  ;;  %v1546_v22 = vmul.f32 0.2, %v1010_v20  ;;  %v1610_v28 = vmul.f32 0.2, %v1266_v32  ;;  %v1258_v39 = vadd.f32 %v3323_v2, %v3546_v25  ;;  %v1013_v40 = vadd.f32 %v3548_v26, %v3323_v2 }
 0x13b   : > { %vm1416_vm8 = vcmp.gt.f32.partialorder %v1002_v21, 0.0  ;;  %2310 = vst.msk [vmem:[%s3335_s27 + $0x74] sm:$0xf] %vm2280_vm1, %v2764_v16  ;;  %v1733_v23 = vsel %vm1477_vm5, %v1245_v15, %v1605_v35  ;;  %v1544_v30 = vmul.f32 0.2, %v1002_v21  ;;  %v3644_v42 = vpop.f32.mrb[43].mxu0  ;;  %v1269_v46 = vadd.f32 %v3560_v27, %v3323_v2 }
 0x13c   : > { %v2828_v43 = vpack.c.bf16 %v1733_v23, %v1733_v23  ;;  %v1674_v44 = vsel %vm1418_vm6, %v1010_v20, %v1546_v22  ;;  %v1738_v45 = vsel %vm1482_vm7, %v1266_v32, %v1610_v28  ;;  %v3649_v47 = vpop.f32.mrb[43].mxu1  ;;  %vm1480_vm9 = vcmp.gt.f32.partialorder %v1258_v39, 0.0  ;;  %v3688_v18 = vld [vmem:[%s3989_s2] ss:$0 sm:$0xff] }
 0x13d   : > { %v2769_v50 = vpack.c.bf16 %v1674_v44, %v1674_v44  ;;  %v2833_v25 = vpack.c.bf16 %v1738_v45, %v1738_v45  ;;  %v1672_v51 = vsel %vm1416_vm8, %v1002_v21, %v1544_v30  ;;  %v1608_v54 = vmul.f32 0.2, %v1258_v39  ;;  %v3661_v61 = vpop.f32.mrb[44].mxu0 }
 0x13e   : > { %2374 = vst.msk [vmem:[%s3335_s27 + $0x174] sm:$0xf] %vm2280_vm1, %v2828_v43  ;;  %v2767_v26 = vpack.c.bf16 %v1672_v51, %v1672_v51  ;;  %vm1419_vm10 = vcmp.gt.f32.partialorder %v1013_v40, 0.0  ;;  %v1547_v55 = vmul.f32 0.2, %v1013_v40  ;;  %vm1483_vm11 = vcmp.gt.f32.partialorder %v1269_v46, 0.0 }
 0x13f   : > { %2315 = vst.msk [vmem:[%s3335_s27 + $0x88] sm:$0xf] %vm2280_vm1, %v2769_v50  ;;  %2379 = vst.msk [vmem:[%s3335_s27 + $0x188] sm:$0xf] %vm2280_vm1, %v2833_v25  ;;  %v1611_v48 = vmul.f32 0.2, %v1269_v46  ;;  %v1005_v27 = vadd.f32 %v3323_v2, %v3562_v33  ;;  %v1261_v60 = vadd.f32 %v3323_v2, %v3564_v37  ;;  %v1736_v52 = vsel %vm1480_vm9, %v1258_v39, %v1608_v54 }
 0x140   : > { %2313 = vst.msk [vmem:[%s3335_s27 + $0x80] sm:$0xf] %vm2280_vm1, %v2767_v26  ;;  %v1675_v3 = vsel %vm1419_vm10, %v1013_v40, %v1547_v55  ;;  %v1026_v4 = vadd.f32 %v3572_v49, %v3323_v2  ;;  %v1282_v6 = vadd.f32 %v3578_v57, %v3323_v2  ;;  %v3669_v7 = vpop.f32.mrb[44].mxu1  ;;  %v3671_v33 = vpop.f32.mrb[45].mxu0  ;;  %v2831_v8 = vpack.c.bf16 %v1736_v52, %v1736_v52 }
 0x141   : > { %v2770_v37 = vpack.c.bf16 %v1675_v3, %v1675_v3  ;;  %v1739_v56 = vsel %vm1483_vm11, %v1269_v46, %v1611_v48  ;;  %vm1417_vm12 = vcmp.gt.f32.partialorder %v1005_v27, 0.0  ;;  %v3673_v10 = vpop.f32.mrb[45].mxu1  ;;  %v3675_v59 = vpop.f32.mrb[46].mxu0  ;;  %v1545_v12 = vmul.f32 0.2, %v1005_v27 }
 0x142   : > { %v2834_v11 = vpack.c.bf16 %v1739_v56, %v1739_v56  ;;  %vm1481_vm13 = vcmp.gt.f32.partialorder %v1261_v60, 0.0  ;;  %v1609_v49 = vmul.f32 0.2, %v1261_v60  ;;  %v3677_v13 = vpop.f32.mrb[46].mxu1  ;;  %2377 = vst.msk [vmem:[%s3335_s27 + $0x180] sm:$0xf] %vm2280_vm1, %v2831_v8  ;;  %v1018_v63 = vadd.f32 %v3688_v18, %v3580_v58 }
 0x143   : > { %2316 = vst.msk [vmem:[%s3335_s27 + $0x8c] sm:$0xf] %vm2280_vm1, %v2770_v37  ;;  %vm1422_vm14 = vcmp.gt.f32.partialorder %v1026_v4, 0.0  ;;  %v1550_v2 = vmul.f32 0.2, %v1026_v4  ;;  %vm1486_vm15 = vcmp.gt.f32.partialorder %v1282_v6, 0.0  ;;  %v1673_v14 = vsel %vm1417_vm12, %v1005_v27, %v1545_v12 }
 0x144   : > { %v1614_v57 = vmul.f32 0.2, %v1282_v6  ;;  %2380 = vst.msk [vmem:[%s3335_s27 + $0x18c] sm:$0xf] %vm2280_vm1, %v2834_v11  ;;  %v1737_v17 = vsel %vm1481_vm13, %v1261_v60, %v1609_v49  ;;  %v1274_v19 = vadd.f32 %v3688_v18, %v3586_v62  ;;  %v3694_v15 = vpop.f32.mrb[47].mxu0  ;;  %v3696_v20 = vpop.f32.mrb[47].mxu1  ;;  %v2768_v29 = vpack.c.bf16 %v1673_v14, %v1673_v14 }
 0x145   : > { %v2832_v31 = vpack.c.bf16 %v1737_v17, %v1737_v17  ;;  %v1678_v32 = vsel %vm1422_vm14, %v1026_v4, %v1550_v2  ;;  %vm1420_vm0 = vcmp.gt.f32.partialorder %v1018_v63, 0.0  ;;  %v1548_v22 = vmul.f32 0.2, %v1018_v63  ;;  %v3706_v23 = vpop.f32.mrb[48].mxu0 }
 0x146   : > { %v1742_v21 = vsel %vm1486_vm15, %v1282_v6, %v1614_v57  ;;  %v2773_v16 = vpack.c.bf16 %v1678_v32, %v1678_v32  ;;  %2314 = vst.msk [vmem:[%s3335_s27 + $0x84] sm:$0xf] %vm2280_vm1, %v2768_v29  ;;  %vm1484_vm2 = vcmp.gt.f32.partialorder %v1274_v19, 0.0  ;;  %v1612_v58 = vmul.f32 0.2, %v1274_v19  ;;  %v3718_v43 = vpop.f32.mrb[48].mxu1 }
 0x147   : > { %v2837_v35 = vpack.c.bf16 %v1742_v21, %v1742_v21  ;;  %2378 = vst.msk [vmem:[%s3335_s27 + $0x184] sm:$0xf] %vm2280_vm1, %v2832_v31  ;;  %v1029_v62 = vadd.f32 %v3688_v18, %v3588_v1  ;;  %v1285_v28 = vadd.f32 %v3688_v18, %v3598_v5  ;;  %v1676_v30 = vsel %vm1420_vm0, %v1018_v63, %v1548_v22  ;;  %v3720_v5 = vpop.f32.mrb[49].mxu0  ;;  %v3722_v50 = vpop.f32.mrb[49].mxu1 }
 0x148   : > { %2319 = vst.msk [vmem:[%s3335_s27 + $0x98] sm:$0xf] %vm2280_vm1, %v2773_v16  ;;  %v1021_v39 = vadd.f32 %v3688_v18, %v3600_v53  ;;  %v1277_v40 = vadd.f32 %v3688_v18, %v3606_v9  ;;  %v1042_v1 = vadd.f32 %v3688_v18, %v3616_v24  ;;  %v2771_v44 = vpack.c.bf16 %v1676_v30, %v1676_v30  ;;  %v3724_v25 = vpop.f32.mrb[50].mxu0  ;;  %v3726_v51 = vpop.f32.mrb[50].mxu1 }
 0x149   : > { %2383 = vst.msk [vmem:[%s3335_s27 + $0x198] sm:$0xf] %vm2280_vm1, %v2837_v35  ;;  %v1740_v45 = vsel %vm1484_vm2, %v1274_v19, %v1612_v58  ;;  %vm1423_vm3 = vcmp.gt.f32.partialorder %v1029_v62, 0.0  ;;  %v1551_v46 = vmul.f32 0.2, %v1029_v62  ;;  %vm1487_vm4 = vcmp.gt.f32.partialorder %v1285_v28, 0.0 }
 0x14a   : > { %v2835_v53 = vpack.c.bf16 %v1740_v45, %v1740_v45  ;;  %v1615_v9 = vmul.f32 0.2, %v1285_v28  ;;  %vm1421_vm5 = vcmp.gt.f32.partialorder %v1021_v39, 0.0  ;;  %v3728_v24 = vpop.f32.mrb[51].mxu0  ;;  %2317 = vst.msk [vmem:[%s3335_s27 + $0x90] sm:$0xf] %vm2280_vm1, %v2771_v44  ;;  %v1298_v8 = vadd.f32 %v3688_v18, %v3624_v34 }
 0x14b   : > { %v1679_v26 = vsel %vm1423_vm3, %v1029_v62, %v1551_v46  ;;  %v1549_v54 = vmul.f32 0.2, %v1021_v39  ;;  %vm1485_vm6 = vcmp.gt.f32.partialorder %v1277_v40, 0.0  ;;  %v1613_v55 = vmul.f32 0.2, %v1277_v40  ;;  %v3732_v48 = vpop.f32.mrb[51].mxu1 }
 0x14c   : > { %2381 = vst.msk [vmem:[%s3335_s27 + $0x190] sm:$0xf] %vm2280_vm1, %v2835_v53  ;;  %v2774_v27 = vpack.c.bf16 %v1679_v26, %v1679_v26  ;;  %v1743_v60 = vsel %vm1487_vm4, %v1285_v28, %v1615_v9  ;;  %vm1426_vm7 = vcmp.gt.f32.partialorder %v1042_v1, 0.0  ;;  %v1554_v52 = vmul.f32 0.2, %v1042_v1 }
 0x14d   : > { %v2838_v3 = vpack.c.bf16 %v1743_v60, %v1743_v60  ;;  %v1677_v4 = vsel %vm1421_vm5, %v1021_v39, %v1549_v54  ;;  %v1741_v6 = vsel %vm1485_vm6, %v1277_v40, %v1613_v55  ;;  %v1034_v12 = vadd.f32 %v3688_v18, %v3626_v0  ;;  %v3746_v14 = vpop.f32.mrb[52].mxu0 }
 0x14e   : > { %2320 = vst.msk [vmem:[%s3335_s27 + $0x9c] sm:$0xf] %vm2280_vm1, %v2774_v27  ;;  %v2772_v37 = vpack.c.bf16 %v1677_v4, %v1677_v4  ;;  %v2836_v56 = vpack.c.bf16 %v1741_v6, %v1741_v6  ;;  %v1682_v11 = vsel %vm1426_vm7, %v1042_v1, %v1554_v52  ;;  %vm1490_vm8 = vcmp.gt.f32.partialorder %v1298_v8, 0.0  ;;  %v3756_v63 = vpop.f32.mrb[52].mxu1  ;;  %v3758_v19 = vpop.f32.mrb[53].mxu0 }
 0x14f   : > { %2384 = vst.msk [vmem:[%s3335_s27 + $0x19c] sm:$0xf] %vm2280_vm1, %v2838_v3  ;;  %v2777_v49 = vpack.c.bf16 %v1682_v11, %v1682_v11  ;;  %v1618_v2 = vmul.f32 0.2, %v1298_v8  ;;  %v1290_v57 = vadd.f32 %v3688_v18, %v3630_v36  ;;  %vm1424_vm9 = vcmp.gt.f32.partialorder %v1034_v12, 0.0  ;;  %v3764_v32 = vpop.f32.mrb[53].mxu1 }
 0x150   : > { %2318 = vst.msk [vmem:[%s3335_s27 + $0x94] sm:$0xf] %vm2280_vm1, %v2772_v37  ;;  %2382 = vst.msk [vmem:[%s3335_s27 + $0x194] sm:$0xf] %vm2280_vm1, %v2836_v56  ;;  %v1552_v34 = vmul.f32 0.2, %v1034_v12  ;;  %v1045_v17 = vadd.f32 %v3688_v18, %v3632_v38  ;;  %v1301_v0 = vadd.f32 %v3688_v18, %v3642_v41  ;;  %v1037_v31 = vadd.f32 %v3688_v18, %v3644_v42 }
 0x151   : > { %2323 = vst.msk [vmem:[%s3335_s27 + $0xa8] sm:$0xf] %vm2280_vm1, %v2777_v49  ;;  %v1746_v36 = vsel %vm1490_vm8, %v1298_v8, %v1618_v2  ;;  %vm1488_vm10 = vcmp.gt.f32.partialorder %v1290_v57, 0.0  ;;  %v1616_v29 = vmul.f32 0.2, %v1290_v57  ;;  %v3766_v21 = vpop.f32.mrb[54].mxu0  ;;  %v1293_v45 = vadd.f32 %v3688_v18, %v3649_v47 }
 0x152   : > { %v2841_v38 = vpack.c.bf16 %v1746_v36, %v1746_v36  ;;  %v1680_v41 = vsel %vm1424_vm9, %v1034_v12, %v1552_v34  ;;  %vm1427_vm11 = vcmp.gt.f32.partialorder %v1045_v17, 0.0  ;;  %v1555_v16 = vmul.f32 0.2, %v1045_v17  ;;  %v3768_v35 = vpop.f32.mrb[54].mxu1  ;;  %v3770_v22 = vpop.f32.mrb[55].mxu0 }
 0x153   : > { %v2775_v58 = vpack.c.bf16 %v1680_v41, %v1680_v41  ;;  %v1744_v62 = vsel %vm1488_vm10, %v1290_v57, %v1616_v29  ;;  %vm1491_vm12 = vcmp.gt.f32.partialorder %v1301_v0, 0.0  ;;  %v1619_v28 = vmul.f32 0.2, %v1301_v0  ;;  %v3772_v30 = vpop.f32.mrb[55].mxu1 }
 0x154   : > { %2387 = vst.msk [vmem:[%s3335_s27 + $0x1a8] sm:$0xf] %vm2280_vm1, %v2841_v38  ;;  %v2839_v42 = vpack.c.bf16 %v1744_v62, %v1744_v62  ;;  %v1683_v39 = vsel %vm1427_vm11, %v1045_v17, %v1555_v16  ;;  %vm1425_vm13 = vcmp.gt.f32.partialorder %v1037_v31, 0.0  ;;  %v1553_v40 = vmul.f32 0.2, %v1037_v31 }
 0x155   : > { %2321 = vst.msk [vmem:[%s3335_s27 + $0xa0] sm:$0xf] %vm2280_vm1, %v2775_v58  ;;  %v2778_v1 = vpack.c.bf16 %v1683_v39, %v1683_v39  ;;  %v1747_v44 = vsel %vm1491_vm12, %v1301_v0, %v1619_v28  ;;  %v1058_v46 = vadd.f32 %v3688_v18, %v3661_v61  ;;  %v1314_v26 = vadd.f32 %v3688_v18, %v3669_v7  ;;  %v3790_v47 = vpop.f32.mrb[56].mxu0 }
 0x156   : > { %2385 = vst.msk [vmem:[%s3335_s27 + $0x1a0] sm:$0xf] %vm2280_vm1, %v2839_v42  ;;  %v2842_v53 = vpack.c.bf16 %v1747_v44, %v1747_v44  ;;  %v1681_v9 = vsel %vm1425_vm13, %v1037_v31, %v1553_v40  ;;  %v1050_v54 = vadd.f32 %v3688_v18, %v3671_v33  ;;  %vm1489_vm14 = vcmp.gt.f32.partialorder %v1293_v45, 0.0  ;;  %v3800_v4 = vpop.f32.mrb[56].mxu1  ;;  %v3802_v6 = vpop.f32.mrb[57].mxu0 }
 0x157   : > { %2324 = vst.msk [vmem:[%s3335_s27 + $0xac] sm:$0xf] %vm2280_vm1, %v2778_v1  ;;  %v2776_v55 = vpack.c.bf16 %v1681_v9, %v1681_v9  ;;  %v1617_v27 = vmul.f32 0.2, %v1293_v45  ;;  %vm1430_vm15 = vcmp.gt.f32.partialorder %v1058_v46, 0.0  ;;  %vm1494_vm0 = vcmp.gt.f32.partialorder %v1314_v26, 0.0 }
 0x158   : > { %2388 = vst.msk [vmem:[%s3335_s27 + $0x1ac] sm:$0xf] %vm2280_vm1, %v2842_v53  ;;  %v1558_v61 = vmul.f32 0.2, %v1058_v46  ;;  %v1622_v60 = vmul.f32 0.2, %v1314_v26  ;;  %v1306_v33 = vadd.f32 %v3688_v18, %v3673_v10  ;;  %v1061_v3 = vadd.f32 %v3688_v18, %v3675_v59 }
 0x159   : > { %vm1428_vm2 = vcmp.gt.f32.partialorder %v1050_v54, 0.0  ;;  %2322 = vst.msk [vmem:[%s3335_s27 + $0xa4] sm:$0xf] %vm2280_vm1, %v2776_v55  ;;  %v1745_v7 = vsel %vm1489_vm14, %v1293_v45, %v1617_v27  ;;  %v1556_v52 = vmul.f32 0.2, %v1050_v54  ;;  %v1317_v11 = vadd.f32 %v3688_v18, %v3677_v13  ;;  %v3806_v12 = vpop.f32.mrb[57].mxu1 }
 0x15a   : > { %v2840_v8 = vpack.c.bf16 %v1745_v7, %v1745_v7  ;;  %v1686_v37 = vsel %vm1430_vm15, %v1058_v46, %v1558_v61  ;;  %v1750_v56 = vsel %vm1494_vm0, %v1314_v26, %v1622_v60  ;;  %v3808_v49 = vpop.f32.mrb[58].mxu0  ;;  %vm1492_vm3 = vcmp.gt.f32.partialorder %v1306_v33, 0.0  ;;  %v3811_v57 = vpop.f32.mrb[58].mxu1 }
 0x15b   : > { %v2781_v10 = vpack.c.bf16 %v1686_v37, %v1686_v37  ;;  %v2845_v2 = vpack.c.bf16 %v1750_v56, %v1750_v56  ;;  %v1684_v59 = vsel %vm1428_vm2, %v1050_v54, %v1556_v52  ;;  %v3813_v34 = vpop.f32.mrb[59].mxu0  ;;  %v1620_v0 = vmul.f32 0.2, %v1306_v33  ;;  %v3817_v36 = vpop.f32.mrb[59].mxu1 }
 0x15c   : > { %2386 = vst.msk [vmem:[%s3335_s27 + $0x1a4] sm:$0xf] %vm2280_vm1, %v2840_v8  ;;  %v2779_v17 = vpack.c.bf16 %v1684_v59, %v1684_v59  ;;  %vm1431_vm4 = vcmp.gt.f32.partialorder %v1061_v3, 0.0  ;;  %v1559_v13 = vmul.f32 0.2, %v1061_v3  ;;  %vm1495_vm5 = vcmp.gt.f32.partialorder %v1317_v11, 0.0 }
 0x15d   : > { %2327 = vst.msk [vmem:[%s3335_s27 + $0xb8] sm:$0xf] %vm2280_vm1, %v2781_v10  ;;  %2391 = vst.msk [vmem:[%s3335_s27 + $0x1b8] sm:$0xf] %vm2280_vm1, %v2845_v2  ;;  %v1623_v29 = vmul.f32 0.2, %v1317_v11  ;;  %v1053_v31 = vadd.f32 %v3688_v18, %v3694_v15  ;;  %v1309_v38 = vadd.f32 %v3688_v18, %v3696_v20  ;;  %v1748_v41 = vsel %vm1492_vm3, %v1306_v33, %v1620_v0 }
 0x15e   : > { %2325 = vst.msk [vmem:[%s3335_s27 + $0xb0] sm:$0xf] %vm2280_vm1, %v2779_v17  ;;  %v1687_v16 = vsel %vm1431_vm4, %v1061_v3, %v1559_v13  ;;  %v1074_v58 = vadd.f32 %v3688_v18, %v3706_v23  ;;  %v1330_v62 = vadd.f32 %v3688_v18, %v3718_v43  ;;  %v2843_v28 = vpack.c.bf16 %v1748_v41, %v1748_v41  ;;  %v3834_v39 = vpop.f32.mrb[60].mxu0  ;;  %v3836_v44 = vpop.f32.mrb[60].mxu1 }
 0x15f   : > { %v2782_v42 = vpack.c.bf16 %v1687_v16, %v1687_v16  ;;  %v1751_v15 = vsel %vm1495_vm5, %v1317_v11, %v1623_v29  ;;  %vm1429_vm6 = vcmp.gt.f32.partialorder %v1053_v31, 0.0  ;;  %v1557_v40 = vmul.f32 0.2, %v1053_v31  ;;  %v3848_v26 = vpop.f32.mrb[61].mxu0  ;;  %v3850_v54 = vpop.f32.mrb[61].mxu1 }
 0x160   : > { %v2846_v20 = vpack.c.bf16 %v1751_v15, %v1751_v15  ;;  %vm1493_vm7 = vcmp.gt.f32.partialorder %v1309_v38, 0.0  ;;  %v1621_v1 = vmul.f32 0.2, %v1309_v38  ;;  %2389 = vst.msk [vmem:[%s3335_s27 + $0x1b0] sm:$0xf] %vm2280_vm1, %v2843_v28  ;;  %vm1434_vm8 = vcmp.gt.f32.partialorder %v1074_v58, 0.0 }
 0x161   : > { %2328 = vst.msk [vmem:[%s3335_s27 + $0xbc] sm:$0xf] %vm2280_vm1, %v2782_v42  ;;  %v1562_v23 = vmul.f32 0.2, %v1074_v58  ;;  %vm1498_vm9 = vcmp.gt.f32.partialorder %v1330_v62, 0.0  ;;  %v1685_v45 = vsel %vm1429_vm6, %v1053_v31, %v1557_v40  ;;  %v1066_v53 = vadd.f32 %v3688_v18, %v3720_v5  ;;  %v3852_v7 = vpop.f32.mrb[62].mxu0 }
 0x162   : > { %v1626_v43 = vmul.f32 0.2, %v1330_v62  ;;  %2392 = vst.msk [vmem:[%s3335_s27 + $0x1bc] sm:$0xf] %vm2280_vm1, %v2846_v20  ;;  %v1749_v46 = vsel %vm1493_vm7, %v1309_v38, %v1621_v1  ;;  %v1322_v9 = vadd.f32 %v3688_v18, %v3722_v50  ;;  %v2780_v55 = vpack.c.bf16 %v1685_v45, %v1685_v45  ;;  %v3854_v52 = vpop.f32.mrb[62].mxu1  ;;  %v3856_v50 = vpop.f32.mrb[63].mxu0 }
 0x163   : > { %v2844_v27 = vpack.c.bf16 %v1749_v46, %v1749_v46  ;;  %v1690_v61 = vsel %vm1434_vm8, %v1074_v58, %v1562_v23  ;;  %vm1432_vm10 = vcmp.gt.f32.partialorder %v1066_v53, 0.0  ;;  %v1560_v3 = vmul.f32 0.2, %v1066_v53  ;;  %v3858_v8 = vpop.f32.mrb[63].mxu1 }
 0x164   : > { %v1754_v60 = vsel %vm1498_vm9, %v1330_v62, %v1626_v43  ;;  %v2785_v5 = vpack.c.bf16 %v1690_v61, %v1690_v61  ;;  %2326 = vst.msk [vmem:[%s3335_s27 + $0xb4] sm:$0xf] %vm2280_vm1, %v2780_v55  ;;  %vm1496_vm11 = vcmp.gt.f32.partialorder %v1322_v9, 0.0  ;;  %v1624_v37 = vmul.f32 0.2, %v1322_v9 }
 0x165   : > { %v2849_v33 = vpack.c.bf16 %v1754_v60, %v1754_v60  ;;  %2390 = vst.msk [vmem:[%s3335_s27 + $0x1b4] sm:$0xf] %vm2280_vm1, %v2844_v27  ;;  %v1077_v56 = vadd.f32 %v3688_v18, %v3724_v25  ;;  %v1333_v11 = vadd.f32 %v3688_v18, %v3726_v51  ;;  %v1688_v10 = vsel %vm1432_vm10, %v1066_v53, %v1560_v3 }
 0x166   : > { %2331 = vst.msk [vmem:[%s3335_s27 + $0xc8] sm:$0xf] %vm2280_vm1, %v2785_v5  ;;  %v1069_v2 = vadd.f32 %v3688_v18, %v3728_v24  ;;  %v1325_v59 = vadd.f32 %v3688_v18, %v3732_v48  ;;  %v1090_v17 = vadd.f32 %v3688_v18, %v3746_v14  ;;  %v2783_v25 = vpack.c.bf16 %v1688_v10, %v1688_v10 }
 0x167   : > { %2395 = vst.msk [vmem:[%s3335_s27 + $0x1c8] sm:$0xf] %vm2280_vm1, %v2849_v33  ;;  %v1752_v0 = vsel %vm1496_vm11, %v1322_v9, %v1624_v37  ;;  %vm1435_vm12 = vcmp.gt.f32.partialorder %v1077_v56, 0.0  ;;  %v1563_v13 = vmul.f32 0.2, %v1077_v56  ;;  %vm1499_vm13 = vcmp.gt.f32.partialorder %v1333_v11, 0.0 }
 0x168   : > { %v2847_v51 = vpack.c.bf16 %v1752_v0, %v1752_v0  ;;  %v1627_v29 = vmul.f32 0.2, %v1333_v11  ;;  %vm1433_vm14 = vcmp.gt.f32.partialorder %v1069_v2, 0.0  ;;  %2329 = vst.msk [vmem:[%s3335_s27 + $0xc0] sm:$0xf] %vm2280_vm1, %v2783_v25  ;;  %vm1497_vm15 = vcmp.gt.f32.partialorder %v1325_v59, 0.0 }
 0x169   : > { %v1691_v31 = vsel %vm1435_vm12, %v1077_v56, %v1563_v13  ;;  %v1561_v24 = vmul.f32 0.2, %v1069_v2  ;;  %v1625_v38 = vmul.f32 0.2, %v1325_v59  ;;  %vm1438_vm0 = vcmp.gt.f32.partialorder %v1090_v17, 0.0 }
 0x16a   : > { %2393 = vst.msk [vmem:[%s3335_s27 + $0x1c0] sm:$0xf] %vm2280_vm1, %v2847_v51  ;;  %v2786_v48 = vpack.c.bf16 %v1691_v31, %v1691_v31  ;;  %v1755_v14 = vsel %vm1499_vm13, %v1333_v11, %v1627_v29  ;;  %v1566_v41 = vmul.f32 0.2, %v1090_v17  ;;  %v1346_v28 = vadd.f32 %v3688_v18, %v3756_v63 }
 0x16b   : > { %v2850_v16 = vpack.c.bf16 %v1755_v14, %v1755_v14  ;;  %v1689_v58 = vsel %vm1433_vm14, %v1069_v2, %v1561_v24  ;;  %v1753_v62 = vsel %vm1497_vm15, %v1325_v59, %v1625_v38  ;;  %v1082_v40 = vadd.f32 %v3688_v18, %v3758_v19 }
 0x16c   : > { %2332 = vst.msk [vmem:[%s3335_s27 + $0xcc] sm:$0xf] %vm2280_vm1, %v2786_v48  ;;  %v2784_v42 = vpack.c.bf16 %v1689_v58, %v1689_v58  ;;  %v2848_v15 = vpack.c.bf16 %v1753_v62, %v1753_v62  ;;  %v1694_v20 = vsel %vm1438_vm0, %v1090_v17, %v1566_v41  ;;  %vm1502_vm2 = vcmp.gt.f32.partialorder %v1346_v28, 0.0 }
 0x16d   : > { %2396 = vst.msk [vmem:[%s3335_s27 + $0x1cc] sm:$0xf] %vm2280_vm1, %v2850_v16  ;;  %v2789_v1 = vpack.c.bf16 %v1694_v20, %v1694_v20  ;;  %v1630_v23 = vmul.f32 0.2, %v1346_v28  ;;  %v1338_v43 = vadd.f32 %v3688_v18, %v3764_v32  ;;  %vm1436_vm3 = vcmp.gt.f32.partialorder %v1082_v40, 0.0 }
 0x16e   : > { %2330 = vst.msk [vmem:[%s3335_s27 + $0xc4] sm:$0xf] %vm2280_vm1, %v2784_v42  ;;  %2394 = vst.msk [vmem:[%s3335_s27 + $0x1c4] sm:$0xf] %vm2280_vm1, %v2848_v15  ;;  %v1564_v63 = vmul.f32 0.2, %v1082_v40  ;;  %v1093_v45 = vadd.f32 %v3688_v18, %v3766_v21  ;;  %v1349_v19 = vadd.f32 %v3688_v18, %v3768_v35  ;;  %v1085_v32 = vadd.f32 %v3688_v18, %v3770_v22 }
 0x16f   : > { %2335 = vst.msk [vmem:[%s3335_s27 + $0xd8] sm:$0xf] %vm2280_vm1, %v2789_v1  ;;  %v1758_v46 = vsel %vm1502_vm2, %v1346_v28, %v1630_v23  ;;  %vm1500_vm4 = vcmp.gt.f32.partialorder %v1338_v43, 0.0  ;;  %v1628_v53 = vmul.f32 0.2, %v1338_v43  ;;  %v1341_v37 = vadd.f32 %v3688_v18, %v3772_v30 }
 0x170   : > { %v2853_v9 = vpack.c.bf16 %v1758_v46, %v1758_v46  ;;  %v1692_v55 = vsel %vm1436_vm3, %v1082_v40, %v1564_v63  ;;  %vm1439_vm5 = vcmp.gt.f32.partialorder %v1093_v45, 0.0  ;;  %v1567_v27 = vmul.f32 0.2, %v1093_v45 }
 0x171   : > { %v2787_v61 = vpack.c.bf16 %v1692_v55, %v1692_v55  ;;  %v1756_v60 = vsel %vm1500_vm4, %v1338_v43, %v1628_v53  ;;  %vm1503_vm6 = vcmp.gt.f32.partialorder %v1349_v19, 0.0  ;;  %v1631_v21 = vmul.f32 0.2, %v1349_v19 }
 0x172   : > { %2399 = vst.msk [vmem:[%s3335_s27 + $0x1d8] sm:$0xf] %vm2280_vm1, %v2853_v9  ;;  %v2851_v35 = vpack.c.bf16 %v1756_v60, %v1756_v60  ;;  %v1695_v5 = vsel %vm1439_vm5, %v1093_v45, %v1567_v27  ;;  %vm1437_vm7 = vcmp.gt.f32.partialorder %v1085_v32, 0.0  ;;  %v1565_v33 = vmul.f32 0.2, %v1085_v32 }
 0x173   : > { %2333 = vst.msk [vmem:[%s3335_s27 + $0xd0] sm:$0xf] %vm2280_vm1, %v2787_v61  ;;  %v2790_v22 = vpack.c.bf16 %v1695_v5, %v1695_v5  ;;  %v1759_v3 = vsel %vm1503_vm6, %v1349_v19, %v1631_v21  ;;  %v1106_v56 = vadd.f32 %v3688_v18, %v3790_v47  ;;  %v1362_v2 = vadd.f32 %v3688_v18, %v3800_v4 }
 0x174   : > { %2397 = vst.msk [vmem:[%s3335_s27 + $0x1d0] sm:$0xf] %vm2280_vm1, %v2851_v35  ;;  %v2854_v11 = vpack.c.bf16 %v1759_v3, %v1759_v3  ;;  %v1693_v10 = vsel %vm1437_vm7, %v1085_v32, %v1565_v33  ;;  %v1098_v59 = vadd.f32 %v3688_v18, %v3802_v6  ;;  %vm1501_vm8 = vcmp.gt.f32.partialorder %v1341_v37, 0.0 }
 0x175   : > { %2336 = vst.msk [vmem:[%s3335_s27 + $0xdc] sm:$0xf] %vm2280_vm1, %v2790_v22  ;;  %v2788_v17 = vpack.c.bf16 %v1693_v10, %v1693_v10  ;;  %v1629_v25 = vmul.f32 0.2, %v1341_v37  ;;  %vm1442_vm9 = vcmp.gt.f32.partialorder %v1106_v56, 0.0  ;;  %vm1506_vm10 = vcmp.gt.f32.partialorder %v1362_v2, 0.0 }
 0x176   : > { %2400 = vst.msk [vmem:[%s3335_s27 + $0x1dc] sm:$0xf] %vm2280_vm1, %v2854_v11  ;;  %v1570_v30 = vmul.f32 0.2, %v1106_v56  ;;  %v1634_v47 = vmul.f32 0.2, %v1362_v2  ;;  %v1354_v6 = vadd.f32 %v3688_v18, %v3806_v12  ;;  %v1109_v13 = vadd.f32 %v3688_v18, %v3808_v49 }
 0x177   : > { %vm1440_vm11 = vcmp.gt.f32.partialorder %v1098_v59, 0.0  ;;  %2334 = vst.msk [vmem:[%s3335_s27 + $0xd4] sm:$0xf] %vm2280_vm1, %v2788_v17  ;;  %v1757_v0 = vsel %vm1501_vm8, %v1341_v37, %v1629_v25  ;;  %v1568_v4 = vmul.f32 0.2, %v1098_v59  ;;  %v1365_v24 = vadd.f32 %v3688_v18, %v3811_v57 }
 0x178   : > { %v2852_v51 = vpack.c.bf16 %v1757_v0, %v1757_v0  ;;  %v1698_v29 = vsel %vm1442_vm9, %v1106_v56, %v1570_v30  ;;  %v1762_v31 = vsel %vm1506_vm10, %v1362_v2, %v1634_v47  ;;  %vm1504_vm12 = vcmp.gt.f32.partialorder %v1354_v6, 0.0 }
 0x179   : > { %v2793_v38 = vpack.c.bf16 %v1698_v29, %v1698_v29  ;;  %v2857_v48 = vpack.c.bf16 %v1762_v31, %v1762_v31  ;;  %v1696_v14 = vsel %vm1440_vm11, %v1098_v59, %v1568_v4  ;;  %v1632_v16 = vmul.f32 0.2, %v1354_v6 }
 0x17a   : > { %2398 = vst.msk [vmem:[%s3335_s27 + $0x1d4] sm:$0xf] %vm2280_vm1, %v2852_v51  ;;  %v2791_v41 = vpack.c.bf16 %v1696_v14, %v1696_v14  ;;  %vm1443_vm13 = vcmp.gt.f32.partialorder %v1109_v13, 0.0  ;;  %v1571_v12 = vmul.f32 0.2, %v1109_v13  ;;  %vm1507_vm14 = vcmp.gt.f32.partialorder %v1365_v24, 0.0 }
 0x17b   : > { %2339 = vst.msk [vmem:[%s3335_s27 + $0xe8] sm:$0xf] %vm2280_vm1, %v2793_v38  ;;  %2403 = vst.msk [vmem:[%s3335_s27 + $0x1e8] sm:$0xf] %vm2280_vm1, %v2857_v48  ;;  %v1635_v49 = vmul.f32 0.2, %v1365_v24  ;;  %v1101_v57 = vadd.f32 %v3688_v18, %v3813_v34  ;;  %v1357_v58 = vadd.f32 %v3688_v18, %v3817_v36  ;;  %v1760_v62 = vsel %vm1504_vm12, %v1354_v6, %v1632_v16 }
 0x17c   : > { %2337 = vst.msk [vmem:[%s3335_s27 + $0xe0] sm:$0xf] %vm2280_vm1, %v2791_v41  ;;  %v1699_v28 = vsel %vm1443_vm13, %v1109_v13, %v1571_v12  ;;  %v1122_v42 = vadd.f32 %v3688_v18, %v3834_v39  ;;  %v1378_v15 = vadd.f32 %v3688_v18, %v3836_v44  ;;  %v2855_v20 = vpack.c.bf16 %v1760_v62, %v1760_v62 }
 0x17d   : > { %v2794_v40 = vpack.c.bf16 %v1699_v28, %v1699_v28  ;;  %v1763_v1 = vsel %vm1507_vm14, %v1365_v24, %v1635_v49  ;;  %vm1441_vm15 = vcmp.gt.f32.partialorder %v1101_v57, 0.0  ;;  %v1569_v23 = vmul.f32 0.2, %v1101_v57 }
 0x17e   : > { %v2858_v34 = vpack.c.bf16 %v1763_v1, %v1763_v1  ;;  %vm1505_vm0 = vcmp.gt.f32.partialorder %v1357_v58, 0.0  ;;  %v1633_v43 = vmul.f32 0.2, %v1357_v58  ;;  %2401 = vst.msk [vmem:[%s3335_s27 + $0x1e0] sm:$0xf] %vm2280_vm1, %v2855_v20  ;;  %vm1446_vm2 = vcmp.gt.f32.partialorder %v1122_v42, 0.0 }
 0x17f   : > { %2340 = vst.msk [vmem:[%s3335_s27 + $0xec] sm:$0xf] %vm2280_vm1, %v2794_v40  ;;  %v1574_v36 = vmul.f32 0.2, %v1122_v42  ;;  %vm1510_vm3 = vcmp.gt.f32.partialorder %v1378_v15, 0.0  ;;  %v1697_v44 = vsel %vm1441_vm15, %v1101_v57, %v1569_v23  ;;  %v1114_v45 = vadd.f32 %v3688_v18, %v3848_v26 }
 0x180   : > { %v1638_v39 = vmul.f32 0.2, %v1378_v15  ;;  %2404 = vst.msk [vmem:[%s3335_s27 + $0x1ec] sm:$0xf] %vm2280_vm1, %v2858_v34  ;;  %v1761_v63 = vsel %vm1505_vm0, %v1357_v58, %v1633_v43  ;;  %v1370_v19 = vadd.f32 %v3688_v18, %v3850_v54  ;;  %v2792_v46 = vpack.c.bf16 %v1697_v44, %v1697_v44 }
 0x181   : > { %v2856_v53 = vpack.c.bf16 %v1761_v63, %v1761_v63  ;;  %v1702_v32 = vsel %vm1446_vm2, %v1122_v42, %v1574_v36  ;;  %vm1444_vm4 = vcmp.gt.f32.partialorder %v1114_v45, 0.0  ;;  %v1572_v61 = vmul.f32 0.2, %v1114_v45 }
 0x182   : > { %v1766_v9 = vsel %vm1510_vm3, %v1378_v15, %v1638_v39  ;;  %v2797_v55 = vpack.c.bf16 %v1702_v32, %v1702_v32  ;;  %2338 = vst.msk [vmem:[%s3335_s27 + $0xe4] sm:$0xf] %vm2280_vm1, %v2792_v46  ;;  %vm1508_vm5 = vcmp.gt.f32.partialorder %v1370_v19, 0.0  ;;  %v1636_v60 = vmul.f32 0.2, %v1370_v19 }
 0x183   : > { %v2861_v27 = vpack.c.bf16 %v1766_v9, %v1766_v9  ;;  %2402 = vst.msk [vmem:[%s3335_s27 + $0x1e4] sm:$0xf] %vm2280_vm1, %v2856_v53  ;;  %v1125_v26 = vadd.f32 %v3688_v18, %v3852_v7  ;;  %v1381_v54 = vadd.f32 %v3688_v18, %v3854_v52  ;;  %v1700_v21 = vsel %vm1444_vm4, %v1114_v45, %v1572_v61 }
 0x184   : > { %2343 = vst.msk [vmem:[%s3335_s27 + $0xf8] sm:$0xf] %vm2280_vm1, %v2797_v55  ;;  %v1117_v35 = vadd.f32 %v3688_v18, %v3856_v50  ;;  %v1373_v5 = vadd.f32 %v3688_v18, %v3858_v8  ;;  %v2795_v33 = vpack.c.bf16 %v1700_v21, %v1700_v21  ;;  %v1764_v22 = vsel %vm1508_vm5, %v1370_v19, %v1636_v60 }
 0x185   : > { %2407 = vst.msk [vmem:[%s3335_s27 + $0x1f8] sm:$0xf] %vm2280_vm1, %v2861_v27  ;;  %vm1447_vm6 = vcmp.gt.f32.partialorder %v1125_v26, 0.0  ;;  %v1575_v3 = vmul.f32 0.2, %v1125_v26  ;;  %v2859_v7 = vpack.c.bf16 %v1764_v22, %v1764_v22  ;;  %vm1511_vm7 = vcmp.gt.f32.partialorder %v1381_v54, 0.0 }
 0x186   : > { %v1639_v52 = vmul.f32 0.2, %v1381_v54  ;;  %vm1445_vm8 = vcmp.gt.f32.partialorder %v1117_v35, 0.0  ;;  %2341 = vst.msk [vmem:[%s3335_s27 + $0xf0] sm:$0xf] %vm2280_vm1, %v2795_v33  ;;  %vm1509_vm9 = vcmp.gt.f32.partialorder %v1373_v5, 0.0 }
 0x187   : > { %v1703_v37 = vsel %vm1447_vm6, %v1125_v26, %v1575_v3  ;;  %v1573_v56 = vmul.f32 0.2, %v1117_v35  ;;  %v1637_v50 = vmul.f32 0.2, %v1373_v5  ;;  %2405 = vst.msk [vmem:[%s3335_s27 + $0x1f0] sm:$0xf] %vm2280_vm1, %v2859_v7 }
 0x188   : > { %v2798_v18 = vpack.c.bf16 %v1703_v37, %v1703_v37  ;;  %v1767_v8 = vsel %vm1511_vm7, %v1381_v54, %v1639_v52 }
 0x189   : > { %v2862_v11 = vpack.c.bf16 %v1767_v8, %v1767_v8  ;;  %v1701_v10 = vsel %vm1445_vm8, %v1117_v35, %v1573_v56  ;;  %v1765_v2 = vsel %vm1509_vm9, %v1373_v5, %v1637_v50 }
 0x18a   : > { %2344 = vst.msk [vmem:[%s3335_s27 + $0xfc] sm:$0xf] %vm2280_vm1, %v2798_v18  ;;  %v2796_v59 = vpack.c.bf16 %v1701_v10, %v1701_v10  ;;  %v2860_v17 = vpack.c.bf16 %v1765_v2, %v1765_v2 }
 0x18b   : > { %2408 = vst.msk [vmem:[%s3335_s27 + $0x1fc] sm:$0xf] %vm2280_vm1, %v2862_v11 }
 0x18c   : > { %2342 = vst.msk [vmem:[%s3335_s27 + $0xf4] sm:$0xf] %vm2280_vm1, %v2796_v59  ;;  %2406 = vst.msk [vmem:[%s3335_s27 + $0x1f4] sm:$0xf] %vm2280_vm1, %v2860_v17 }
 0x18d PF: > { %s13_s12 = sadd.s32 1, %s3146_s12  }
 0x18e   : > { %p10_p4 = scmp.ge.s32.totalorder %s13_s12, 4  }
 0x190   :  { %12 = sbr.rel (!%p10_p4) target bundleno = 1 (0x1), region = 62 }

</bundles_post_ra>
